<compile_context>
chip_gen: v7x
topology: tpu7x:2x2x1
jax: 0.10.0
libtpu: 0.0.40
codegen_flags: <defaults>
</compile_context>

<pallas_src>
import jax
import jax.numpy as jnp
from jax import lax
from jax.experimental import pallas as pl
from jax.experimental.pallas import tpu as pltpu


def _ce_fused_kernel(x_ref, wf_ref, bf_ref, wk_ref, bk_ref, o_ref, feat_ref):
    """Fused ContextEmbeddingBlock forward for one sample.

    x_ref:    (1, C, H*W)   sample, NCHW with spatial flattened (lane-dense block)
    wf_ref:   (C, C)        folded (BN -> 1x1 conv -> BN) matrix, 1/(H*W) pre-folded
    bf_ref:   (1, C)        folded bias
    wk_ref:   (3, 3, C, C)  3x3 conv weights, HWIO
    bk_ref:   (1, C)        3x3 conv bias
    o_ref:    (1, C, H*W)   output sample
    feat_ref: (H+2, W+2, C) VMEM scratch: zero-padded (x + ctx); halo stays in VMEM
    """
    Hp, Wp, C = feat_ref.shape
    H, W = Hp - 2, Wp - 2

    # ---- NCHW -> channels-last on VMEM-resident data (XLU transpose, no HBM pass) ----
    x_t = jnp.transpose(x_ref[0], (1, 0))                        # (H*W, C)

    # ---- GAP + folded (BN -> 1x1 conv -> BN) affine + ReLU: context vector ----
    # 1/(H*W) is folded into wf in the wrapper, so a plain sum suffices here.
    s = jnp.sum(x_t, axis=0, keepdims=True)                      # (1, C)
    ctx = jnp.dot(s, wf_ref[...],
                  preferred_element_type=jnp.float32) + bf_ref[...]
    ctx = jnp.maximum(ctx, 0.0)                                  # (1, C)  ReLU

    # ---- feat = x + ctx written into the interior of a zero ring (SAME padding) ----
    feat_ref[...] = jnp.zeros_like(feat_ref)                     # tiny VMEM memset
    feat_ref[1:H + 1, 1:W + 1, :] = (x_t + ctx).reshape(H, W, C)

    # ---- 3x3 conv: 9 shifted (H*W, C) x (C, C) MXU matmuls, f32 accumulation ----
    # One sublane-shifted slice per dx; the 3 dy taps reuse it via free row slices.
    acc = jnp.broadcast_to(bk_ref[...], (H * W, C)).astype(jnp.float32)
    for dx in range(3):
        col = feat_ref[:, dx:dx + W, :]                          # (H+2, W, C)
        for dy in range(3):
            patch = col[dy:dy + H].reshape(H * W, C)
            acc = acc + jnp.dot(patch, wk_ref[dy, dx],
                                preferred_element_type=jnp.float32)

    # ---- back to NCHW layout (in VMEM) and store lane-dense (C, H*W) block ----
    o_ref[0] = jnp.transpose(acc, (1, 0)).astype(o_ref.dtype)


def context_embedding_block(x_nchw, params, eps=1e-5):
    """Pallas implementation; x_nchw: (N, C, H, W) float32 -> (N, C, H, W)."""
    N, C, H, W = x_nchw.shape
    # Free metadata reshape (no HBM transpose): spatial flattened onto the lane axis.
    x2 = x_nchw.reshape(N, C, H * W).astype(jnp.float32)

    # Fold BN(gap) -> Conv1x1 -> BN (+ the 1/(H*W) mean scale) into one (C, C) matrix
    # and a (1, C) bias.  All of this is tiny one-time wrapper glue.
    s1 = params["bn_gamma"] / jnp.sqrt(params["bn_var"] + eps)
    b1 = params["bn_beta"] - params["bn_mean"] * s1
    wg = params["conv_gap_w"][:, :, 0, 0].T                      # (C_in, C_out)
    s2 = params["gapbn_gamma"] / jnp.sqrt(params["gapbn_var"] + eps)
    b2 = params["gapbn_beta"] - params["gapbn_mean"] * s2
    wf = ((s1[:, None] * wg) * s2[None, :]) / float(H * W)       # (C, C), mean folded in
    wf = wf.astype(jnp.float32)
    bf = (((b1 @ wg) * s2 + b2)[None, :]).astype(jnp.float32)    # (1, C)

    wk = jnp.transpose(params["conv_last_w"], (2, 3, 1, 0)).astype(jnp.float32)  # OIHW->HWIO
    bk = params["conv_last_b"][None, :].astype(jnp.float32)

    # TODO(synk): for v7x (2 TCs, 64 MiB VMEM) at large H*W, add a row-tile grid axis
    # (with a 1-row halo) marked "parallel" instead of whole-sample blocks.
    y2 = pl.pallas_call(
        _ce_fused_kernel,
        out_shape=jax.ShapeDtypeStruct((N, C, H * W), jnp.float32),
        grid=(N,),
        in_specs=[
            pl.BlockSpec((1, C, H * W), lambda n: (n, 0, 0)),    # x (one sample)
            pl.BlockSpec((C, C), lambda n: (0, 0)),              # folded 1x1 matrix
            pl.BlockSpec((1, C), lambda n: (0, 0)),              # folded bias
            pl.BlockSpec((3, 3, C, C), lambda n: (0, 0, 0, 0)),  # 3x3 weights (HWIO)
            pl.BlockSpec((1, C), lambda n: (0, 0)),              # conv bias
        ],
        out_specs=pl.BlockSpec((1, C, H * W), lambda n: (n, 0, 0)),
        scratch_shapes=[pltpu.VMEM((H + 2, W + 2, C), jnp.float32)],
        compiler_params=pltpu.CompilerParams(
            dimension_semantics=("parallel",),
            vmem_limit_bytes=32 * 1024 * 1024),
    )(x2, wf, bf, wk, bk)

    return y2.reshape(N, C, H, W)                                # free reshape


def reference(x_nchw, params, eps=1e-5):
    """Pure-JAX reference of the same (eval-mode) forward pass, in NCHW."""
    gap = jnp.mean(x_nchw, axis=(2, 3))                          # (N, C)
    s1 = params["bn_gamma"] / jnp.sqrt(params["bn_var"] + eps)
    b1 = params["bn_beta"] - params["bn_mean"] * s1
    f = gap * s1[None, :] + b1[None, :]
    g = jnp.einsum("nc,oc->no", f, params["conv_gap_w"][:, :, 0, 0],
                   precision=lax.Precision.HIGHEST)
    s2 = params["gapbn_gamma"] / jnp.sqrt(params["gapbn_var"] + eps)
    b2 = params["gapbn_beta"] - params["gapbn_mean"] * s2
    g = jnp.maximum(g * s2[None, :] + b2[None, :], 0.0)
    feat = x_nchw + g[:, :, None, None]
    out = lax.conv_general_dilated(
        feat, params["conv_last_w"], window_strides=(1, 1), padding="SAME",
        dimension_numbers=("NCHW", "OIHW", "NCHW"),
        precision=lax.Precision.HIGHEST)
    return out + params["conv_last_b"][None, :, None, None]


if __name__ == "__main__":
    # Module defaults are in_dim = out_dim = 128 -> C = 128 is exactly lane-dense.
    N, C, H, W = 2, 128, 16, 16
    key = jax.random.PRNGKey(0)
    ks = jax.random.split(key, 12)

    params = {
        "bn_gamma": jax.random.normal(ks[0], (C,), jnp.float32) * 0.5 + 1.0,
        "bn_beta": jax.random.normal(ks[1], (C,), jnp.float32) * 0.1,
        "bn_mean": jax.random.normal(ks[2], (C,), jnp.float32) * 0.1,
        "bn_var": jax.random.uniform(ks[3], (C,), jnp.float32, 0.5, 1.5),
        "conv_gap_w": jax.random.normal(ks[4], (C, C, 1, 1), jnp.float32) * 0.1,
        "gapbn_gamma": jax.random.normal(ks[5], (C,), jnp.float32) * 0.5 + 1.0,
        "gapbn_beta": jax.random.normal(ks[6], (C,), jnp.float32) * 0.1,
        "gapbn_mean": jax.random.normal(ks[7], (C,), jnp.float32) * 0.1,
        "gapbn_var": jax.random.uniform(ks[8], (C,), jnp.float32, 0.5, 1.5),
        "conv_last_w": jax.random.normal(ks[9], (C, C, 3, 3), jnp.float32) * 0.1,
        "conv_last_b": jax.random.normal(ks[10], (C,), jnp.float32) * 0.1,
    }
    x = jax.random.normal(ks[11], (N, C, H, W), jnp.float32)

    out = jax.block_until_ready(context_embedding_block(x, params))
    ref = jax.block_until_ready(reference(x, params))

    assert out.shape == (N, C, H, W), out.shape
    assert jnp.allclose(out, ref, atol=2e-3, rtol=2e-3), \
        float(jnp.max(jnp.abs(out - ref)))
    print("KERNEL_OK")
</pallas_src>

<mosaic_0001>
module attributes {stable_mosaic.version = 11 : i64} {
  func.func @_ce_fused_kernel(%arg0: i32, %arg1: memref<1x128x256xf32, #tpu.memory_space<vmem>>, %arg2: memref<128x128xf32, #tpu.memory_space<vmem>>, %arg3: memref<1x128xf32, #tpu.memory_space<vmem>>, %arg4: memref<3x3x128x128xf32, #tpu.memory_space<vmem>>, %arg5: memref<1x128xf32, #tpu.memory_space<vmem>>, %arg6: memref<1x128x256xf32, #tpu.memory_space<vmem>>, %arg7: memref<18x18x128xf32, #tpu.memory_space<vmem>>) attributes {dimension_semantics = [#tpu.dimension_semantics<parallel>], iteration_bounds = array<i64: 2>, scalar_prefetch = 0 : i64, scratch_operands = 1 : i64, tpu.core_type = #tpu.core_type<tc>, window_params = [{transform_indices = @transform_0, window_bounds = array<i64: 1, 128, 256>}, {pipeline_mode = #tpu.pipeline_mode<synchronous>, transform_indices = @transform_1, window_bounds = array<i64: 128, 128>}, {pipeline_mode = #tpu.pipeline_mode<synchronous>, transform_indices = @transform_2, window_bounds = array<i64: 1, 128>}, {pipeline_mode = #tpu.pipeline_mode<synchronous>, transform_indices = @transform_3, window_bounds = array<i64: 3, 3, 128, 128>}, {pipeline_mode = #tpu.pipeline_mode<synchronous>, transform_indices = @transform_4, window_bounds = array<i64: 1, 128>}, {transform_indices = @transform_5, window_bounds = array<i64: 1, 128, 256>}]} {
    %c0 = arith.constant 0 : index
    %c0_0 = arith.constant 0 : index
    %c0_1 = arith.constant 0 : index
    %0 = vector.load %arg1[%c0, %c0_0, %c0_1] : memref<1x128x256xf32, #tpu.memory_space<vmem>>, vector<1x128x256xf32>
    %1 = vector.shape_cast %0 : vector<1x128x256xf32> to vector<128x256xf32>
    %2 = tpu.transpose %1, [1, 0] : vector<128x256xf32> -> vector<256x128xf32>
    %cst = arith.constant dense<0.000000e+00> : vector<128xf32>
    %3 = vector.multi_reduction <add>, %2, %cst [0] : vector<256x128xf32> to vector<128xf32>
    %4 = vector.shape_cast %3 : vector<128xf32> to vector<1x128xf32>
    %c0_2 = arith.constant 0 : index
    %c0_3 = arith.constant 0 : index
    %5 = vector.load %arg2[%c0_2, %c0_3] : memref<128x128xf32, #tpu.memory_space<vmem>>, vector<128x128xf32>
    %cst_4 = arith.constant dense<0.000000e+00> : vector<1x128xf32>
    %6 = tpu.matmul %4, %5, %cst_4 {dimension_numbers = #tpu.dot_dimension_numbers<[1], [0], [0], [1], [0, 0, 1, 1], [], []>} : vector<1x128xf32>, vector<128x128xf32>, vector<1x128xf32> -> vector<1x128xf32>
    %c0_5 = arith.constant 0 : index
    %c0_6 = arith.constant 0 : index
    %7 = vector.load %arg3[%c0_5, %c0_6] : memref<1x128xf32, #tpu.memory_space<vmem>>, vector<1x128xf32>
    %8 = arith.addf %6, %7 : vector<1x128xf32>
    %cst_7 = arith.constant 0.000000e+00 : f32
    %9 = vector.broadcast %cst_7 : f32 to vector<1x128xf32>
    %10 = arith.maximumf %8, %9 : vector<1x128xf32>
    %cst_8 = arith.constant 0.000000e+00 : f32
    %11 = vector.broadcast %cst_8 : f32 to vector<18x18x128xf32>
    %c0_9 = arith.constant 0 : index
    %c0_10 = arith.constant 0 : index
    %c0_11 = arith.constant 0 : index
    %12 = vector.load %arg7[%c0_9, %c0_10, %c0_11] : memref<18x18x128xf32, #tpu.memory_space<vmem>>, vector<18x18x128xf32>
    tpu.vector_store %arg7[%c0_9, %c0_10, %c0_11], %11 {strides = array<i32>} : memref<18x18x128xf32, #tpu.memory_space<vmem>>, vector<18x18x128xf32>,
    %13 = vector.broadcast %10 : vector<1x128xf32> to vector<256x128xf32>
    %14 = arith.addf %2, %13 : vector<256x128xf32>
    %15 = vector.shape_cast %14 : vector<256x128xf32> to vector<16x16x128xf32>
    %c1 = arith.constant 1 : index
    %c1_12 = arith.constant 1 : index
    %c0_13 = arith.constant 0 : index
    %16 = vector.load %arg7[%c1, %c1_12, %c0_13] : memref<18x18x128xf32, #tpu.memory_space<vmem>>, vector<16x16x128xf32>
    tpu.vector_store %arg7[%c1, %c1_12, %c0_13], %15 {strides = array<i32>} : memref<18x18x128xf32, #tpu.memory_space<vmem>>, vector<16x16x128xf32>,
    %c0_14 = arith.constant 0 : index
    %c0_15 = arith.constant 0 : index
    %17 = vector.load %arg5[%c0_14, %c0_15] : memref<1x128xf32, #tpu.memory_space<vmem>>, vector<1x128xf32>
    %18 = vector.shape_cast %17 : vector<1x128xf32> to vector<1x128xf32>
    %19 = vector.broadcast %18 : vector<1x128xf32> to vector<256x128xf32>
    %c0_16 = arith.constant 0 : index
    %c0_17 = arith.constant 0 : index
    %c0_18 = arith.constant 0 : index
    %20 = vector.load %arg7[%c0_16, %c0_17, %c0_18] : memref<18x18x128xf32, #tpu.memory_space<vmem>>, vector<18x16x128xf32>
    %21 = vector.extract_strided_slice %20 {offsets = [0, 0, 0], sizes = [16, 16, 128], strides = [1, 1, 1]} : vector<18x16x128xf32> to vector<16x16x128xf32>
    %22 = vector.shape_cast %21 : vector<16x16x128xf32> to vector<256x128xf32>
    %c0_19 = arith.constant 0 : index
    %c0_20 = arith.constant 0 : index
    %c0_21 = arith.constant 0 : index
    %c0_22 = arith.constant 0 : index
    %23 = vector.load %arg4[%c0_19, %c0_20, %c0_21, %c0_22] : memref<3x3x128x128xf32, #tpu.memory_space<vmem>>, vector<1x1x128x128xf32>
    %24 = vector.shape_cast %23 : vector<1x1x128x128xf32> to vector<128x128xf32>
    %cst_23 = arith.constant dense<0.000000e+00> : vector<256x128xf32>
    %25 = tpu.matmul %22, %24, %cst_23 {dimension_numbers = #tpu.dot_dimension_numbers<[1], [0], [0], [1], [0, 0, 1, 1], [], []>} : vector<256x128xf32>, vector<128x128xf32>, vector<256x128xf32> -> vector<256x128xf32>
    %26 = arith.addf %19, %25 : vector<256x128xf32>
    %27 = vector.extract_strided_slice %20 {offsets = [1, 0, 0], sizes = [16, 16, 128], strides = [1, 1, 1]} : vector<18x16x128xf32> to vector<16x16x128xf32>
    %28 = vector.shape_cast %27 : vector<16x16x128xf32> to vector<256x128xf32>
    %c1_24 = arith.constant 1 : index
    %c0_25 = arith.constant 0 : index
    %c0_26 = arith.constant 0 : index
    %c0_27 = arith.constant 0 : index
    %29 = vector.load %arg4[%c1_24, %c0_25, %c0_26, %c0_27] : memref<3x3x128x128xf32, #tpu.memory_space<vmem>>, vector<1x1x128x128xf32>
    %30 = vector.shape_cast %29 : vector<1x1x128x128xf32> to vector<128x128xf32>
    %cst_28 = arith.constant dense<0.000000e+00> : vector<256x128xf32>
    %31 = tpu.matmul %28, %30, %cst_28 {dimension_numbers = #tpu.dot_dimension_numbers<[1], [0], [0], [1], [0, 0, 1, 1], [], []>} : vector<256x128xf32>, vector<128x128xf32>, vector<256x128xf32> -> vector<256x128xf32>
    %32 = arith.addf %26, %31 : vector<256x128xf32>
    %33 = vector.extract_strided_slice %20 {offsets = [2, 0, 0], sizes = [16, 16, 128], strides = [1, 1, 1]} : vector<18x16x128xf32> to vector<16x16x128xf32>
    %34 = vector.shape_cast %33 : vector<16x16x128xf32> to vector<256x128xf32>
    %c2 = arith.constant 2 : index
    %c0_29 = arith.constant 0 : index
    %c0_30 = arith.constant 0 : index
    %c0_31 = arith.constant 0 : index
    %35 = vector.load %arg4[%c2, %c0_29, %c0_30, %c0_31] : memref<3x3x128x128xf32, #tpu.memory_space<vmem>>, vector<1x1x128x128xf32>
    %36 = vector.shape_cast %35 : vector<1x1x128x128xf32> to vector<128x128xf32>
    %cst_32 = arith.constant dense<0.000000e+00> : vector<256x128xf32>
    %37 = tpu.matmul %34, %36, %cst_32 {dimension_numbers = #tpu.dot_dimension_numbers<[1], [0], [0], [1], [0, 0, 1, 1], [], []>} : vector<256x128xf32>, vector<128x128xf32>, vector<256x128xf32> -> vector<256x128xf32>
    %38 = arith.addf %32, %37 : vector<256x128xf32>
    %c0_33 = arith.constant 0 : index
    %c1_34 = arith.constant 1 : index
    %c0_35 = arith.constant 0 : index
    %39 = vector.load %arg7[%c0_33, %c1_34, %c0_35] : memref<18x18x128xf32, #tpu.memory_space<vmem>>, vector<18x16x128xf32>
    %40 = vector.extract_strided_slice %39 {offsets = [0, 0, 0], sizes = [16, 16, 128], strides = [1, 1, 1]} : vector<18x16x128xf32> to vector<16x16x128xf32>
    %41 = vector.shape_cast %40 : vector<16x16x128xf32> to vector<256x128xf32>
    %c0_36 = arith.constant 0 : index
    %c1_37 = arith.constant 1 : index
    %c0_38 = arith.constant 0 : index
    %c0_39 = arith.constant 0 : index
    %42 = vector.load %arg4[%c0_36, %c1_37, %c0_38, %c0_39] : memref<3x3x128x128xf32, #tpu.memory_space<vmem>>, vector<1x1x128x128xf32>
    %43 = vector.shape_cast %42 : vector<1x1x128x128xf32> to vector<128x128xf32>
    %cst_40 = arith.constant dense<0.000000e+00> : vector<256x128xf32>
    %44 = tpu.matmul %41, %43, %cst_40 {dimension_numbers = #tpu.dot_dimension_numbers<[1], [0], [0], [1], [0, 0, 1, 1], [], []>} : vector<256x128xf32>, vector<128x128xf32>, vector<256x128xf32> -> vector<256x128xf32>
    %45 = arith.addf %38, %44 : vector<256x128xf32>
    %46 = vector.extract_strided_slice %39 {offsets = [1, 0, 0], sizes = [16, 16, 128], strides = [1, 1, 1]} : vector<18x16x128xf32> to vector<16x16x128xf32>
    %47 = vector.shape_cast %46 : vector<16x16x128xf32> to vector<256x128xf32>
    %c1_41 = arith.constant 1 : index
    %c1_42 = arith.constant 1 : index
    %c0_43 = arith.constant 0 : index
    %c0_44 = arith.constant 0 : index
    %48 = vector.load %arg4[%c1_41, %c1_42, %c0_43, %c0_44] : memref<3x3x128x128xf32, #tpu.memory_space<vmem>>, vector<1x1x128x128xf32>
    %49 = vector.shape_cast %48 : vector<1x1x128x128xf32> to vector<128x128xf32>
    %cst_45 = arith.constant dense<0.000000e+00> : vector<256x128xf32>
    %50 = tpu.matmul %47, %49, %cst_45 {dimension_numbers = #tpu.dot_dimension_numbers<[1], [0], [0], [1], [0, 0, 1, 1], [], []>} : vector<256x128xf32>, vector<128x128xf32>, vector<256x128xf32> -> vector<256x128xf32>
    %51 = arith.addf %45, %50 : vector<256x128xf32>
    %52 = vector.extract_strided_slice %39 {offsets = [2, 0, 0], sizes = [16, 16, 128], strides = [1, 1, 1]} : vector<18x16x128xf32> to vector<16x16x128xf32>
    %53 = vector.shape_cast %52 : vector<16x16x128xf32> to vector<256x128xf32>
    %c2_46 = arith.constant 2 : index
    %c1_47 = arith.constant 1 : index
    %c0_48 = arith.constant 0 : index
    %c0_49 = arith.constant 0 : index
    %54 = vector.load %arg4[%c2_46, %c1_47, %c0_48, %c0_49] : memref<3x3x128x128xf32, #tpu.memory_space<vmem>>, vector<1x1x128x128xf32>
    %55 = vector.shape_cast %54 : vector<1x1x128x128xf32> to vector<128x128xf32>
    %cst_50 = arith.constant dense<0.000000e+00> : vector<256x128xf32>
    %56 = tpu.matmul %53, %55, %cst_50 {dimension_numbers = #tpu.dot_dimension_numbers<[1], [0], [0], [1], [0, 0, 1, 1], [], []>} : vector<256x128xf32>, vector<128x128xf32>, vector<256x128xf32> -> vector<256x128xf32>
    %57 = arith.addf %51, %56 : vector<256x128xf32>
    %c0_51 = arith.constant 0 : index
    %c2_52 = arith.constant 2 : index
    %c0_53 = arith.constant 0 : index
    %58 = vector.load %arg7[%c0_51, %c2_52, %c0_53] : memref<18x18x128xf32, #tpu.memory_space<vmem>>, vector<18x16x128xf32>
    %59 = vector.extract_strided_slice %58 {offsets = [0, 0, 0], sizes = [16, 16, 128], strides = [1, 1, 1]} : vector<18x16x128xf32> to vector<16x16x128xf32>
    %60 = vector.shape_cast %59 : vector<16x16x128xf32> to vector<256x128xf32>
    %c0_54 = arith.constant 0 : index
    %c2_55 = arith.constant 2 : index
    %c0_56 = arith.constant 0 : index
    %c0_57 = arith.constant 0 : index
    %61 = vector.load %arg4[%c0_54, %c2_55, %c0_56, %c0_57] : memref<3x3x128x128xf32, #tpu.memory_space<vmem>>, vector<1x1x128x128xf32>
    %62 = vector.shape_cast %61 : vector<1x1x128x128xf32> to vector<128x128xf32>
    %cst_58 = arith.constant dense<0.000000e+00> : vector<256x128xf32>
    %63 = tpu.matmul %60, %62, %cst_58 {dimension_numbers = #tpu.dot_dimension_numbers<[1], [0], [0], [1], [0, 0, 1, 1], [], []>} : vector<256x128xf32>, vector<128x128xf32>, vector<256x128xf32> -> vector<256x128xf32>
    %64 = arith.addf %57, %63 : vector<256x128xf32>
    %65 = vector.extract_strided_slice %58 {offsets = [1, 0, 0], sizes = [16, 16, 128], strides = [1, 1, 1]} : vector<18x16x128xf32> to vector<16x16x128xf32>
    %66 = vector.shape_cast %65 : vector<16x16x128xf32> to vector<256x128xf32>
    %c1_59 = arith.constant 1 : index
    %c2_60 = arith.constant 2 : index
    %c0_61 = arith.constant 0 : index
    %c0_62 = arith.constant 0 : index
    %67 = vector.load %arg4[%c1_59, %c2_60, %c0_61, %c0_62] : memref<3x3x128x128xf32, #tpu.memory_space<vmem>>, vector<1x1x128x128xf32>
    %68 = vector.shape_cast %67 : vector<1x1x128x128xf32> to vector<128x128xf32>
    %cst_63 = arith.constant dense<0.000000e+00> : vector<256x128xf32>
    %69 = tpu.matmul %66, %68, %cst_63 {dimension_numbers = #tpu.dot_dimension_numbers<[1], [0], [0], [1], [0, 0, 1, 1], [], []>} : vector<256x128xf32>, vector<128x128xf32>, vector<256x128xf32> -> vector<256x128xf32>
    %70 = arith.addf %64, %69 : vector<256x128xf32>
    %71 = vector.extract_strided_slice %58 {offsets = [2, 0, 0], sizes = [16, 16, 128], strides = [1, 1, 1]} : vector<18x16x128xf32> to vector<16x16x128xf32>
    %72 = vector.shape_cast %71 : vector<16x16x128xf32> to vector<256x128xf32>
    %c2_64 = arith.constant 2 : index
    %c2_65 = arith.constant 2 : index
    %c0_66 = arith.constant 0 : index
    %c0_67 = arith.constant 0 : index
    %73 = vector.load %arg4[%c2_64, %c2_65, %c0_66, %c0_67] : memref<3x3x128x128xf32, #tpu.memory_space<vmem>>, vector<1x1x128x128xf32>
    %74 = vector.shape_cast %73 : vector<1x1x128x128xf32> to vector<128x128xf32>
    %cst_68 = arith.constant dense<0.000000e+00> : vector<256x128xf32>
    %75 = tpu.matmul %72, %74, %cst_68 {dimension_numbers = #tpu.dot_dimension_numbers<[1], [0], [0], [1], [0, 0, 1, 1], [], []>} : vector<256x128xf32>, vector<128x128xf32>, vector<256x128xf32> -> vector<256x128xf32>
    %76 = arith.addf %70, %75 : vector<256x128xf32>
    %77 = tpu.transpose %76, [1, 0] : vector<256x128xf32> -> vector<128x256xf32>
    %c0_69 = arith.constant 0 : index
    %c0_70 = arith.constant 0 : index
    %c0_71 = arith.constant 0 : index
    %78 = vector.load %arg6[%c0_69, %c0_70, %c0_71] : memref<1x128x256xf32, #tpu.memory_space<vmem>>, vector<1x128x256xf32>
    %79 = vector.shape_cast %78 : vector<1x128x256xf32> to vector<128x256xf32>
    %80 = vector.shape_cast %77 : vector<128x256xf32> to vector<1x128x256xf32>
    tpu.vector_store %arg6[%c0_69, %c0_70, %c0_71], %80 {strides = array<i32>} : memref<1x128x256xf32, #tpu.memory_space<vmem>>, vector<1x128x256xf32>,
    return
  }
  func.func @transform_0(%arg0: i32) -> (i32, i32, i32) {
    %c0_i32 = arith.constant 0 : i32
    %c0_i32_0 = arith.constant 0 : i32
    %c0_i32_1 = arith.constant 0 : i32
    return %arg0, %c0_i32, %c0_i32_0 : i32, i32, i32
  }
  func.func @transform_1(%arg0: i32) -> (i32, i32) {
    %c0_i32 = arith.constant 0 : i32
    %c0_i32_0 = arith.constant 0 : i32
    %c0_i32_1 = arith.constant 0 : i32
    return %c0_i32, %c0_i32_0 : i32, i32
  }
  func.func @transform_2(%arg0: i32) -> (i32, i32) {
    %c0_i32 = arith.constant 0 : i32
    %c0_i32_0 = arith.constant 0 : i32
    %c0_i32_1 = arith.constant 0 : i32
    return %c0_i32, %c0_i32_0 : i32, i32
  }
  func.func @transform_3(%arg0: i32) -> (i32, i32, i32, i32) {
    %c0_i32 = arith.constant 0 : i32
    %c0_i32_0 = arith.constant 0 : i32
    %c0_i32_1 = arith.constant 0 : i32
    %c0_i32_2 = arith.constant 0 : i32
    %c0_i32_3 = arith.constant 0 : i32
    return %c0_i32, %c0_i32_0, %c0_i32_1, %c0_i32_2 : i32, i32, i32, i32
  }
  func.func @transform_4(%arg0: i32) -> (i32, i32) {
    %c0_i32 = arith.constant 0 : i32
    %c0_i32_0 = arith.constant 0 : i32
    %c0_i32_1 = arith.constant 0 : i32
    return %c0_i32, %c0_i32_0 : i32, i32
  }
  func.func @transform_5(%arg0: i32) -> (i32, i32, i32) {
    %c0_i32 = arith.constant 0 : i32
    %c0_i32_0 = arith.constant 0 : i32
    %c0_i32_1 = arith.constant 0 : i32
    return %arg0, %c0_i32, %c0_i32_0 : i32, i32, i32
  }
}

</mosaic_0001>

<bundles_post_ra>
// kernel: tpu_custom_call.1
= control target key start
LH: loop header
LB: loop body
LE: loop exit
PB: predicated region body
PF: predicated region fallthrough
CT: control target
= control target key end

     0   :  { %10 = vsyncpa [#allocation4], 0  ;;  %s6708_s0 = inlined_call_operand.hbm [shape: f32[2,128,256], index: 0, kind: input, shape index: {}]   ;;  %s6709_s1 = inlined_call_operand.hbm [shape: f32[128,128], index: 1, kind: input, shape index: {}]   ;;  %s6710_s2 = inlined_call_operand.vmem [shape: f32[1,128], index: 2, kind: input, shape index: {}]   ;;  %s6711_s3 = inlined_call_operand.hbm [shape: f32[3,3,128,128], index: 3, kind: input, shape index: {}]   ;;  %s6712_s4 = inlined_call_operand.vmem [shape: f32[1,128], index: 4, kind: input, shape index: {}]   ;;  %s6713_s5 = inlined_call_operand.hbm [shape: f32[2,128,256], index: 5, kind: output, shape index: {}]  }
   0x1   :  { %12 = vsyncpa [#allocation4 + $0x1], 0 }
   0x2   :  { %13 = vsyncpa [#allocation7], 0 }
   0x3   :  { %14 = vsyncpa [#allocation5], 0 }
   0x4   :  { %16 = vsyncpa [#allocation5 + $0x1], 0  ;;  %s5545_s18 = smov 0   ;;  %s5547_s19 = smov 0  }
   0x5   :  { %s5549_s20 = smov 0   ;;  %s5551_s21 = smov 0  }
   0x6 LB: > { %s5566_s22 = sadd.s32 4294967295, %s5500_s21   ;;  %s3398_s23 = sadd.s32 4294967294, %s5500_s21   ;;  %s5500_s21 = sphi %s5551_s21, %s6769_s21   ;;  %s5496_s20 = sphi %s5549_s20, %s6768_s20   ;;  %s5492_s19 = sphi %s5547_s19, %s6767_s19   ;;  %s5488_s18 = sphi %s5545_s18, %s6766_s18  }
   0x7   : > { %p42_p0 = scmp.ne.s32.totalorder %s5492_s19, %s5488_s18  ;;  %p6714_p1 = scmp.eq.s32.totalorder %s5566_s22, 0 }
   0x8   : > { %p156_p3 = scmp.eq.s32.totalorder %s3398_s23, 1  ;;  %p3399_p5 = scmp.ge.s32.totalorder %s5500_s21, 1 }
   0x9   : > { %p5575_p4 = por %p6714_p1, %p42_p0  ;;  %p163_p7 = scmp.lt.s32.totalorder %s5500_s21, 3 }
   0xa   : > { %p5580_p6 = por %p156_p3, %p42_p0  ;;  %s5502_s27 = smov [#allocation6]  }
   0xb   : > { %s6735_s24 = scalar_select %p5575_p4, 1, 0 }
   0xc   : > { %s6736_s25 = scalar_select %p5580_p6, 1, 0 }
   0xd   : > { %p5585_p8 = pnand %p3399_p5, %p163_p7  ;;  %s175_s28 = sshll.u32 %s5502_s27, 4  ;;  %s5589_s28 = int_to_ptr.vmem [resolvable:$true] %s175_s28 }
   0xe   : > { %s5503_s30 = smov [#allocation8]   ;;  %s5344_s9 = scalar_lea.hbm %s6709_s1, 2048 }
   0xf   : > { %p5251_p9 = pneg %p5585_p8  ;;  %s191_s6 = sshll.u32 %s5503_s30, 4  ;;  %s5600_s6 = int_to_ptr.vmem [resolvable:$true] %s191_s6 }
  0x10   : > { %p5345_p12 = scmp.ne.s32.totalorder %s6709_s1, %s5344_s9  ;;  %p5351_p5 = scmp.lt.u32.totalorder %s5344_s9, %s6709_s1 }
  0x11   : > { %p5596_p11 = pnand %p5251_p9, %p6714_p1 }
  0x13   : > { %p5346_p13 = pneg %p5596_p11 }
  0x15   : > { %p5347_p0 = pnand %p5346_p13, %p5345_p12 }
  0x17   : > { %p5348_p3 = pneg %p5347_p0 }
  0x19   : > { %p5353_p7 = pnand %p5351_p5, %p5348_p3 }
  0x1b   : > { %5356 = shalt.err (!%p5353_p7)
}
  0x1c   : > { %s5357_s14 = scalar_lea.vmem %s5589_s28, 2048  ;;  %p5365_p2 = scmp.lt.s32.totalorder %s5589_s28, %s5589_s28 }
  0x1d   : > { %p5358_p9 = scmp.ne.s32.totalorder %s5589_s28, %s5357_s14  ;;  %p5366_p12 = scmp.lt.s32.totalorder %s5357_s14, %s5357_s14 }
  0x1f   : > { %p5360_p10 = pnand %p5358_p9, %p5346_p13  ;;  %p5367_p0 = por %p5366_p12, %p5365_p2 }
  0x21   : > { %p5361_p1 = pneg %p5360_p10 }
  0x23   : > { %p5368_p6 = pnand %p5367_p0, %p5361_p1 }
  0x25   : > { %5371 = shalt.err (!%p5368_p6)
}
  0x26   : > { %s5504_s15 = smov 128   ;;  %s5505_s16 = smov 8  }
  0x27   : > { %5254 = dma.hbm_to_vmem [thread:$0]  (!%p5596_p11), %s6709_s1, 2048, %s5589_s28, [#allocation7], %s5504_s15, %s5504_s15, %s5505_s16  }
  0x28   : > { %s5372_s7 = scalar_lea.hbm %s6711_s3, 18432 }
  0x29   : > { %p5373_p2 = scmp.ne.s32.totalorder %s6711_s3, %s5372_s7  ;;  %p5379_p10 = scmp.lt.u32.totalorder %s5372_s7, %s6711_s3 }
  0x2b   : > { %p5375_p1 = pnand %p5373_p2, %p5346_p13 }
  0x2d   : > { %p5376_p6 = pneg %p5375_p1 }
  0x2f   : > { %p5381_p3 = pnand %p5379_p10, %p5376_p6 }
  0x31   : > { %5384 = shalt.err (!%p5381_p3)
}
  0x32   : > { %s5385_s28 = scalar_lea.vmem %s5600_s6, 18432  ;;  %p5393_p12 = scmp.lt.s32.totalorder %s5600_s6, %s5600_s6 }
  0x33   : > { %p5386_p5 = scmp.ne.s32.totalorder %s5600_s6, %s5385_s28  ;;  %p5394_p0 = scmp.lt.s32.totalorder %s5385_s28, %s5385_s28 }
  0x35   : > { %p5388_p7 = pnand %p5386_p5, %p5346_p13  ;;  %p5395_p2 = por %p5394_p0, %p5393_p12 }
  0x37   : > { %p5389_p9 = pneg %p5388_p7 }
  0x39   : > { %p5396_p1 = pnand %p5395_p2, %p5389_p9 }
  0x3b   : > { %5399 = shalt.err (!%p5396_p1)
}
  0x3c   : > { %5257 = dma.hbm_to_vmem [thread:$0]  (!%p5596_p11), %s6711_s3, 18432, %s5600_s6, [#allocation7], %s5504_s15, %s5504_s15, %s5505_s16  }
  0x3d   : > { %s5655_s14 = sadd.s32 1, %s5500_s21   ;;  %s29_s29 = sadd.s32 1, %s5496_s20 }
  0x3e   : > { %s26_s17 = ssub.s32 %s5500_s21, %s5655_s14  ;;  %p36_p13 = scmp.ne.s32.totalorder %s5496_s20, %s5492_s19 }
  0x3f   : > { %p27_p6 = scmp.eq.s32.totalorder %s26_s17, 0  ;;  %p37_p10 = scmp.eq.s32.totalorder %s5500_s21, 0 }
  0x40   : > { %p6739_p3 = scmp.eq.s32.totalorder %s5566_s22, 1  ;;  %p5268_p7 = scmp.lt.s32.totalorder %s5500_s21, 2 }
  0x41   : > { %s5671_s27 = scalar_select %p27_p6, %s5496_s20, %s29_s29  }
  0x42   : > { %p5665_p5 = por %p6739_p3, %p36_p13  ;;  %p38_p9 = por %p37_p10, %p36_p13 }
  0x43   : > { %s208_s30 = sand.u32 1, %s5496_s20   ;;  %s3417_s6 = sshll.u32 %s5500_s21, 12 }
  0x44   : > { %s6740_s23 = scalar_select %p5665_p5, 1, 0 }
  0x45   : > { %s3403_s7 = sshll.u32 %s208_s30, 8  ;;  %s5678_s8 = scalar_lea.hbm %s6708_s0, %s3417_s6 }
  0x46   : > { %s212_s9 = scalar_lea.vmem [#allocation3], %s3403_s7  ;;  %p5682_p11 = pnand %p5268_p7, %p38_p9 }
  0x47   : > { %s219_s10 = sshll.u32 %s212_s9, 4  ;;  %s5686_s28 = scalar_lea.sflag [#allocation4], %s208_s30  ;;  %s5680_s10 = int_to_ptr.vmem [resolvable:$true] %s219_s10 }
  0x48   : > { %s5400_s12 = scalar_lea.hbm %s5678_s8, 4096  ;;  %p5402_p0 = pneg %p5682_p11 }
  0x49   : > { %p5401_p12 = scmp.ne.s32.totalorder %s5678_s8, %s5400_s12  ;;  %s5405_s17 = scalar_lea.hbm %s6708_s0, 8192 }
  0x4a   : > { %p5406_p13 = scmp.lt.u32.totalorder %s5678_s8, %s6708_s0  ;;  %p5407_p6 = scmp.lt.u32.totalorder %s5405_s17, %s5400_s12 }
  0x4b   : > { %p5403_p2 = pnand %p5402_p0, %p5401_p12  ;;  %p5409_p3 = scmp.lt.u32.totalorder %s5400_s12, %s5678_s8 }
  0x4c   : > { %p5408_p10 = por %p5407_p6, %p5406_p13 }
  0x4d   : > { %p5404_p1 = pneg %p5403_p2 }
  0x4e   : > { %p5410_p7 = por %p5409_p3, %p5408_p10 }
  0x50   : > { %p5411_p9 = pnand %p5410_p7, %p5404_p1 }
  0x52   : > { %5414 = shalt.err (!%p5411_p9)
}
  0x53   : > { %s5415_s30 = scalar_lea.vmem %s5680_s10, 4096  ;;  %s5506_s15 = smov [#allocation3]  }
  0x54   : > { %p5416_p12 = scmp.ne.s32.totalorder %s5680_s10, %s5415_s30  ;;  %s5420_s16 = sshll.u32 %s5506_s15, 4  ;;  %s5421_s16 = int_to_ptr.vmem [resolvable:$false] %s5420_s16 }
  0x55   : > { %s5422_s9 = scalar_lea.vmem %s5421_s16, 8192  ;;  %p5423_p4 = scmp.lt.s32.totalorder %s5680_s10, %s5421_s16 }
  0x56   : > { %p5418_p2 = pnand %p5416_p12, %p5402_p0  ;;  %p5424_p13 = scmp.lt.s32.totalorder %s5422_s9, %s5415_s30 }
  0x58   : > { %p5419_p5 = pneg %p5418_p2  ;;  %p5425_p6 = por %p5424_p13, %p5423_p4 }
  0x5a   : > { %p5426_p10 = pnand %p5425_p6, %p5419_p5 }
  0x5c   : > { %5429 = shalt.err (!%p5426_p10)
}
  0x5d   : > { %s5507_s12 = smov 256   ;;  %s5508_s13 = smov 16  }
  0x5e   : > { %5261 = dma.hbm_to_vmem [thread:$0]  (!%p5682_p11), %s5678_s8, 4096, %s5680_s10, %s5686_s28, %s5507_s12, %s5507_s12, %s5508_s13  }
  0x5f   : > { %231 = sbr.rel (%p5585_p8) target bundleno = 1259 (0x4eb), region = 40 }
  0x66   : > { %s5717_s29 = sand.u32 1, %s5492_s19   ;;  %p6742_p4 = scmp.ne.s32.totalorder %s6735_s24, 0 }
  0x67   : > { %s3407_s17 = sshll.u32 %s5717_s29, 8  ;;  %s234_s7 = scalar_lea.sflag [#allocation4], %s5717_s29 }
  0x68   : > { %s5723_s6 = scalar_lea.vmem [#allocation3], %s3407_s17 }
  0x69   : > { %5475 = dma.done.wait (%p6742_p4), %s234_s7, 4096  }
  0x6a   : > { %5477 = vsyncadd (%p6742_p4), %s234_s7, 4294963200  ;;  %p6743_p5 = scmp.eq.s32.totalorder %s5566_s22, 0 }
  0x6c   : > { %5479 = dma.done.wait (%p6743_p5), [#allocation7], 20480   ;;  %p6744_p8 = pmov %p6743_p5 }
  0x6d   : > { %v5509_v0 = vmov 0.0   ;;  %v272_v1 = vld [vmem:[%s5723_s6] sm:$0xff]  ;;  %v274_v2 = vld [vmem:[%s5723_s6 + $0x10] sm:$0xff]  ;;  %v273_v3 = vld [vmem:[%s5723_s6 + $0x8] sm:$0xff]  ;;  %v5510_v36 = vmov 0.0|0.0   ;;  %vm5511_vm0 = vmmov 0  }
  0x6e   : > { %5481 = vsyncadd (%p6744_p8), [#allocation7], 4294946816  ;;  %496 = vst [vmem:[#allocation2 + $0x18] sm:$0xff] %v5509_v0  ;;  %304 = vxpose.xlu0.b32.start [1/16] %v272_v1, 128  ;;  %336 = vxpose.xlu1.b32.start [1/16] %v273_v3, 128  ;;  %v275_v4 = vld [vmem:[%s5723_s6 + $0x18] sm:$0xff]  ;;  %v276_v5 = vld [vmem:[%s5723_s6 + $0x20] sm:$0xff]  ;;  %s6623_s11 = scalar_lea.vmem [#allocation9], %s3407_s17 }
  0x6f   : > { %497 = vst [vmem:[#allocation2 + $0x20] sm:$0xff] %v5509_v0  ;;  %493 = vst [vmem:[#allocation2] sm:$0xff] %v5509_v0  ;;  %v277_v6 = vld [vmem:[%s5723_s6 + $0x28] sm:$0xff]  ;;  %v278_v7 = vld [vmem:[%s5723_s6 + $0x30] sm:$0xff]  ;;  %4623 = vmatprep.subr.bf16.mxu0 %v5510_v36  ;;  %3900 = vmatprep.mubr.msk.f32.mxu0 %vm5511_vm0, %v5509_v0  ;;  %s3418_s28 = sshll.u32 %s5566_s22, 12  ;;  %s3306_s30 = sshll.u32 %s6623_s11, 4  ;;  %s6663_s30 = int_to_ptr.vmem [resolvable:$true] %s3306_s30 }
  0x70   : > { %494 = vst [vmem:[#allocation2 + $0x8] sm:$0xff] %v5509_v0  ;;  %495 = vst [vmem:[#allocation2 + $0x10] sm:$0x3] %v5509_v0  ;;  %v279_v8 = vld [vmem:[%s5723_s6 + $0x38] sm:$0xff]  ;;  %v280_v9 = vld [vmem:[%s5723_s6 + $0x40] sm:$0xff]  ;;  %s6661_s9 = scalar_lea.hbm %s6713_s5, %s3418_s28  ;;  %s3293_s12 = scalar_lea.sflag [#allocation5], %s5717_s29 }
  0x71   : > { %498 = vst [vmem:[#allocation2 + $0x28] sm:$0x3] %v5509_v0  ;;  %499 = vst [vmem:[#allocation2 + $0x30] sm:$0xff] %v5509_v0  ;;  %v281_v10 = vld [vmem:[%s5723_s6 + $0x48] sm:$0xff]  ;;  %v282_v11 = vld [vmem:[%s5723_s6 + $0x50] sm:$0xff]  ;;  %s5430_s13 = scalar_lea.vmem %s6663_s30, 4096 }
  0x72   : > { %500 = vst [vmem:[#allocation2 + $0x38] sm:$0xff] %v5509_v0  ;;  %501 = vst [vmem:[#allocation2 + $0x40] sm:$0x3] %v5509_v0  ;;  %305 = vxpose.xlu0.b32.cont [2/16] %v274_v2, 128  ;;  %337 = vxpose.xlu1.b32.cont [2/16] %v275_v4, 128  ;;  %v283_v12 = vld [vmem:[%s5723_s6 + $0x58] sm:$0xff]  ;;  %v284_v13 = vld [vmem:[%s5723_s6 + $0x60] sm:$0xff]  ;;  %p5431_p11 = scmp.ne.s32.totalorder %s6663_s30, %s5430_s13  ;;  %p6763_p0 = scmp.ne.s32.totalorder %s6740_s23, 0 }
  0x73   : > { %502 = vst [vmem:[#allocation2 + $0x48] sm:$0xff] %v5509_v0  ;;  %503 = vst [vmem:[#allocation2 + $0x50] sm:$0xff] %v5509_v0  ;;  %v285_v14 = vld [vmem:[%s5723_s6 + $0x68] sm:$0xff]  ;;  %v286_v15 = vld [vmem:[%s5723_s6 + $0x70] sm:$0xff]  ;;  %s5512_s22 = smov [#allocation9]  }
  0x74   : > { %504 = vst [vmem:[#allocation2 + $0x58] sm:$0x3] %v5509_v0  ;;  %505 = vst [vmem:[#allocation2 + $0x60] sm:$0xff] %v5509_v0  ;;  %v287_v16 = vld [vmem:[%s5723_s6 + $0x78] sm:$0xff]  ;;  %v288_v17 = vld [vmem:[%s5723_s6 + $0x80] sm:$0xff]  ;;  %p5432_p1 = pnand %p5431_p11, %p6763_p0  ;;  %s5434_s17 = sshll.u32 %s5512_s22, 4  ;;  %s5435_s17 = int_to_ptr.vmem [resolvable:$false] %s5434_s17 }
  0x75   : > { %506 = vst [vmem:[#allocation2 + $0x68] sm:$0xff] %v5509_v0  ;;  %507 = vst [vmem:[#allocation2 + $0x70] sm:$0x3] %v5509_v0  ;;  %v289_v18 = vld [vmem:[%s5723_s6 + $0x88] sm:$0xff]  ;;  %v290_v19 = vld [vmem:[%s5723_s6 + $0x90] sm:$0xff]  ;;  %s5436_s7 = scalar_lea.vmem %s5435_s17, 8192  ;;  %p5437_p7 = scmp.lt.s32.totalorder %s6663_s30, %s5435_s17 }
  0x76   : > { %508 = vst [vmem:[#allocation2 + $0x78] sm:$0xff] %v5509_v0  ;;  %509 = vst [vmem:[#allocation2 + $0x80] sm:$0xff] %v5509_v0  ;;  %306 = vxpose.xlu0.b32.cont [3/16] %v276_v5, 128  ;;  %338 = vxpose.xlu1.b32.cont [3/16] %v277_v6, 128  ;;  %v291_v20 = vld [vmem:[%s5723_s6 + $0x98] sm:$0xff]  ;;  %v292_v21 = vld [vmem:[%s5723_s6 + $0xa0] sm:$0xff]  ;;  %p5433_p3 = pneg %p5432_p1  ;;  %p5438_p9 = scmp.lt.s32.totalorder %s5436_s7, %s5430_s13 }
  0x77   : > { %510 = vst [vmem:[#allocation2 + $0x88] sm:$0x3] %v5509_v0  ;;  %511 = vst [vmem:[#allocation2 + $0x90] sm:$0xff] %v5509_v0  ;;  %v293_v22 = vld [vmem:[%s5723_s6 + $0xa8] sm:$0xff]  ;;  %v294_v23 = vld [vmem:[%s5723_s6 + $0xb0] sm:$0xff] }
  0x78   : > { %512 = vst [vmem:[#allocation2 + $0x98] sm:$0xff] %v5509_v0  ;;  %513 = vst [vmem:[#allocation2 + $0xa0] sm:$0x3] %v5509_v0  ;;  %v295_v24 = vld [vmem:[%s5723_s6 + $0xb8] sm:$0xff]  ;;  %v296_v25 = vld [vmem:[%s5723_s6 + $0xc0] sm:$0xff]  ;;  %p5439_p12 = por %p5438_p9, %p5437_p7 }
  0x79   : > { %514 = vst [vmem:[#allocation2 + $0xa8] sm:$0xff] %v5509_v0  ;;  %515 = vst [vmem:[#allocation2 + $0xb0] sm:$0xff] %v5509_v0  ;;  %v297_v26 = vld [vmem:[%s5723_s6 + $0xc8] sm:$0xff]  ;;  %v298_v27 = vld [vmem:[%s5723_s6 + $0xd0] sm:$0xff] }
  0x7a   : > { %516 = vst [vmem:[#allocation2 + $0xb8] sm:$0x3] %v5509_v0  ;;  %517 = vst [vmem:[#allocation2 + $0xc0] sm:$0xff] %v5509_v0  ;;  %307 = vxpose.xlu0.b32.cont [4/16] %v278_v7, 128  ;;  %339 = vxpose.xlu1.b32.cont [4/16] %v279_v8, 128  ;;  %v299_v28 = vld [vmem:[%s5723_s6 + $0xd8] sm:$0xff]  ;;  %v300_v29 = vld [vmem:[%s5723_s6 + $0xe0] sm:$0xff]  ;;  %p5440_p2 = pnand %p5439_p12, %p5433_p3 }
  0x7b   : > { %518 = vst [vmem:[#allocation2 + $0xc8] sm:$0xff] %v5509_v0  ;;  %519 = vst [vmem:[#allocation2 + $0xd0] sm:$0x3] %v5509_v0  ;;  %v301_v30 = vld [vmem:[%s5723_s6 + $0xe8] sm:$0xff]  ;;  %v302_v31 = vld [vmem:[%s5723_s6 + $0xf0] sm:$0xff] }
  0x7c   : > { %520 = vst [vmem:[#allocation2 + $0xd8] sm:$0xff] %v5509_v0  ;;  %521 = vst [vmem:[#allocation2 + $0xe0] sm:$0xff] %v5509_v0  ;;  %v303_v32 = vld [vmem:[%s5723_s6 + $0xf8] sm:$0xff]  ;;  %v405_v33 = vld [vmem:[#allocation6] sm:$0xff] }
  0x7d   : > { %522 = vst [vmem:[#allocation2 + $0xe8] sm:$0x3] %v5509_v0  ;;  %523 = vst [vmem:[#allocation2 + $0xf0] sm:$0xff] %v5509_v0  ;;  %v406_v34 = vld [vmem:[#allocation6 + $0x8] sm:$0xff]  ;;  %v407_v37 = vld [vmem:[#allocation6 + $0x10] sm:$0xff] }
  0x7e   : > { %524 = vst [vmem:[#allocation2 + $0xf8] sm:$0xff] %v5509_v0  ;;  %525 = vst [vmem:[#allocation2 + $0x100] sm:$0x3] %v5509_v0  ;;  %308 = vxpose.xlu0.b32.cont [5/16] %v280_v9, 128  ;;  %340 = vxpose.xlu1.b32.cont [5/16] %v281_v10, 128  ;;  %v4624_v35 = vpack.c.bf16 %v406_v34, %v405_v33  ;;  %v408_v38 = vld [vmem:[#allocation6 + $0x18] sm:$0xff]  ;;  %v409_v40 = vld [vmem:[#allocation6 + $0x20] sm:$0xff] }
  0x7f   : > { %526 = vst [vmem:[#allocation2 + $0x108] sm:$0xff] %v5509_v0  ;;  %527 = vst [vmem:[#allocation2 + $0x110] sm:$0xff] %v5509_v0  ;;  %v4627_v39 = vpack.c.bf16 %v408_v38, %v407_v37  ;;  %v410_v41 = vld [vmem:[#allocation6 + $0x28] sm:$0xff]  ;;  %v411_v43 = vld [vmem:[#allocation6 + $0x30] sm:$0xff] }
  0x80   : > { %528 = vst [vmem:[#allocation2 + $0x118] sm:$0x3] %v5509_v0  ;;  %529 = vst [vmem:[#allocation2 + $0x120] sm:$0xff] %v5509_v0  ;;  %4625 = vmatpush3.bf16.msra.mxu0 %v4624_v35  ;;  %v4630_v42 = vpack.c.bf16 %v410_v41, %v409_v40  ;;  %v412_v44 = vld [vmem:[#allocation6 + $0x38] sm:$0xff]  ;;  %v413_v46 = vld [vmem:[#allocation6 + $0x40] sm:$0xff] }
  0x81   : > { %530 = vst [vmem:[#allocation2 + $0x128] sm:$0xff] %v5509_v0  ;;  %531 = vst [vmem:[#allocation2 + $0x130] sm:$0x3] %v5509_v0  ;;  %4626 = vmatprep.subr.bf16.mxu0 %v5510_v36  ;;  %v4633_v45 = vpack.c.bf16 %v412_v44, %v411_v43  ;;  %v414_v47 = vld [vmem:[#allocation6 + $0x48] sm:$0xff]  ;;  %v415_v49 = vld [vmem:[#allocation6 + $0x50] sm:$0xff] }
  0x82   : > { %532 = vst [vmem:[#allocation2 + $0x138] sm:$0xff] %v5509_v0  ;;  %533 = vst [vmem:[#allocation2 + $0x140] sm:$0xff] %v5509_v0  ;;  %309 = vxpose.xlu0.b32.cont [6/16] %v282_v11, 128  ;;  %341 = vxpose.xlu1.b32.cont [6/16] %v283_v12, 128  ;;  %v4636_v48 = vpack.c.bf16 %v414_v47, %v413_v46  ;;  %v416_v50 = vld [vmem:[#allocation6 + $0x58] sm:$0xff]  ;;  %v417_v52 = vld [vmem:[#allocation6 + $0x60] sm:$0xff] }
  0x83   : > { %534 = vst [vmem:[#allocation2 + $0x148] sm:$0x3] %v5509_v0  ;;  %535 = vst [vmem:[#allocation2 + $0x150] sm:$0xff] %v5509_v0  ;;  %v4639_v51 = vpack.c.bf16 %v416_v50, %v415_v49  ;;  %v418_v53 = vld [vmem:[#allocation6 + $0x68] sm:$0xff]  ;;  %v419_v55 = vld [vmem:[#allocation6 + $0x70] sm:$0xff] }
  0x84   : > { %536 = vst [vmem:[#allocation2 + $0x158] sm:$0xff] %v5509_v0  ;;  %537 = vst [vmem:[#allocation2 + $0x160] sm:$0x3] %v5509_v0  ;;  %4628 = vmatpush3.bf16.msra.mxu0 %v4627_v39  ;;  %v4642_v54 = vpack.c.bf16 %v418_v53, %v417_v52  ;;  %v420_v56 = vld [vmem:[#allocation6 + $0x78] sm:$0xff]  ;;  %v659_v58 = vld [vmem:[#allocation8] sm:$0xff] }
  0x85   : > { %538 = vst [vmem:[#allocation2 + $0x168] sm:$0xff] %v5509_v0  ;;  %539 = vst [vmem:[#allocation2 + $0x170] sm:$0xff] %v5509_v0  ;;  %4629 = vmatprep.subr.bf16.mxu0 %v5510_v36  ;;  %v4645_v57 = vpack.c.bf16 %v420_v56, %v419_v55  ;;  %v660_v59 = vld [vmem:[#allocation8 + $0x8] sm:$0xff]  ;;  %v1791_v61 = vld [vmem:[#allocation8 + $0x200] sm:$0xff] }
  0x86   : > { %540 = vst [vmem:[#allocation2 + $0x178] sm:$0x3] %v5509_v0  ;;  %541 = vst [vmem:[#allocation2 + $0x180] sm:$0xff] %v5509_v0  ;;  %310 = vxpose.xlu0.b32.cont [7/16] %v284_v13, 128  ;;  %342 = vxpose.xlu1.b32.cont [7/16] %v285_v14, 128  ;;  %v5820_v60 = vpack.c.bf16 %v660_v59, %v659_v58  ;;  %v1792_v62 = vld [vmem:[#allocation8 + $0x208] sm:$0xff]  ;;  %v1793_v1 = vld [vmem:[#allocation8 + $0x210] sm:$0xff] }
  0x87   : > { %542 = vst [vmem:[#allocation2 + $0x188] sm:$0xff] %v5509_v0  ;;  %543 = vst [vmem:[#allocation2 + $0x190] sm:$0x3] %v5509_v0  ;;  %v5822_v63 = vpack.c.bf16 %v1792_v62, %v1791_v61  ;;  %v1794_v2 = vld [vmem:[#allocation8 + $0x218] sm:$0xff]  ;;  %v1795_v4 = vld [vmem:[#allocation8 + $0x220] sm:$0xff] }
  0x88   : > { %544 = vst [vmem:[#allocation2 + $0x198] sm:$0xff] %v5509_v0  ;;  %545 = vst [vmem:[#allocation2 + $0x1a0] sm:$0xff] %v5509_v0  ;;  %4631 = vmatpush3.bf16.msra.mxu0 %v4630_v42  ;;  %v5827_v3 = vpack.c.bf16 %v1794_v2, %v1793_v1  ;;  %v1796_v5 = vld [vmem:[#allocation8 + $0x228] sm:$0xff]  ;;  %v1797_v7 = vld [vmem:[#allocation8 + $0x230] sm:$0xff] }
  0x89   : > { %546 = vst [vmem:[#allocation2 + $0x1a8] sm:$0x3] %v5509_v0  ;;  %4632 = vmatprep.subr.bf16.mxu0 %v5510_v36  ;;  %6745 = vst [vmem:[#allocation13_spill] sm:$0xff] %v5822_v63  ;;  %4935 = vmatprep.subr.bf16.mxu1 %v5822_v63  ;;  %v5831_v6 = vpack.c.bf16 %v1796_v5, %v1795_v4  ;;  %v1798_v8 = vld [vmem:[#allocation8 + $0x238] sm:$0xff] }
  0x8a   : > { %311 = vxpose.xlu0.b32.cont [8/16] %v286_v15, 128  ;;  %343 = vxpose.xlu1.b32.cont [8/16] %v287_v16, 128  ;;  %6746 = vst [vmem:[#allocation14_spill] sm:$0xff] %v5827_v3  ;;  %v5835_v9 = vpack.c.bf16 %v1798_v8, %v1797_v7 }
  0x8b   : > { %4943 = vmatpush3.bf16.msra.mxu1 %v5822_v63  ;;  %6747 = vst [vmem:[#allocation15_spill] sm:$0xff] %v5831_v6 }
  0x8c   : > { %4634 = vmatpush3.bf16.msra.mxu0 %v4633_v45  ;;  %4936 = vmatprep.subr.bf16.mxu1 %v5827_v3  ;;  %6748 = vst [vmem:[#allocation16_spill] sm:$0xff] %v5835_v9 }
  0x8d   : > { %4635 = vmatprep.subr.bf16.mxu0 %v5510_v36 }
  0x8e   : > { %312 = vxpose.xlu0.b32.cont [9/16] %v288_v17, 128  ;;  %344 = vxpose.xlu1.b32.cont [9/16] %v289_v18, 128 }
  0x8f   : > { %4944 = vmatpush3.bf16.msra.mxu1 %v5827_v3 }
  0x90   : > { %4637 = vmatpush3.bf16.msra.mxu0 %v4636_v48  ;;  %4937 = vmatprep.subr.bf16.mxu1 %v5831_v6 }
  0x91   : > { %4638 = vmatprep.subr.bf16.mxu0 %v5510_v36 }
  0x92   : > { %313 = vxpose.xlu0.b32.cont [10/16] %v290_v19, 128  ;;  %345 = vxpose.xlu1.b32.cont [10/16] %v291_v20, 128 }
  0x93   : > { %4945 = vmatpush3.bf16.msra.mxu1 %v5831_v6 }
  0x94   : > { %4640 = vmatpush3.bf16.msra.mxu0 %v4639_v51  ;;  %4938 = vmatprep.subr.bf16.mxu1 %v5835_v9 }
  0x95   : > { %4641 = vmatprep.subr.bf16.mxu0 %v5510_v36 }
  0x96   : > { %314 = vxpose.xlu0.b32.cont [11/16] %v292_v21, 128  ;;  %346 = vxpose.xlu1.b32.cont [11/16] %v293_v22, 128 }
  0x97   : > { %4946 = vmatpush3.bf16.msra.mxu1 %v5835_v9 }
  0x98   : > { %4643 = vmatpush3.bf16.msra.mxu0 %v4642_v54 }
  0x99   : > { %4644 = vmatprep.subr.bf16.mxu0 %v5510_v36 }
  0x9a   : > { %315 = vxpose.xlu0.b32.cont [12/16] %v294_v23, 128  ;;  %347 = vxpose.xlu1.b32.cont [12/16] %v295_v24, 128 }
  0x9c   : > { %4646 = vmatpush3.bf16.msra.mxu0 %v4645_v57 }
  0x9d   : > { %4648 = vmatprep.subr.bf16.mxu0 %v5820_v60 }
  0x9e   : > { %316 = vxpose.xlu0.b32.cont [13/16] %v296_v25, 128  ;;  %348 = vxpose.xlu1.b32.cont [13/16] %v297_v26, 128 }
  0xa2   : > { %317 = vxpose.xlu0.b32.cont [14/16] %v298_v27, 128  ;;  %349 = vxpose.xlu1.b32.cont [14/16] %v299_v28, 128 }
  0xa6   : > { %318 = vxpose.xlu0.b32.cont [15/16] %v300_v29, 128  ;;  %350 = vxpose.xlu1.b32.cont [15/16] %v301_v30, 128 }
  0xaa   : > { %319 = vxpose.xlu0.b32.end [16/16] %v302_v31, 128  ;;  %351 = vxpose.xlu1.b32.end [16/16] %v303_v32, 128 }
  0xee   : > { %v5839_v10 = vpop.trf.xlu0  ;;  %v5841_v11 = vpop.trf.xlu1 }
  0xf2   : > { %v5843_v12 = vpop.trf.xlu0  ;;  %v5845_v13 = vpop.trf.xlu1 }
  0xf3   : > { %v368_v25 = vadd.f32 %v5843_v12, %v5839_v10 }
  0xf6   : > { %v5847_v14 = vpop.trf.xlu0  ;;  %v5851_v16 = vpop.trf.xlu1 }
  0xf7   : > { %v369_v26 = vadd.f32 %v368_v25, %v5847_v14 }
  0xfa   : > { %v5849_v15 = vpop.trf.xlu0  ;;  %v5855_v18 = vpop.trf.xlu1 }
  0xfb   : > { %v370_v29 = vadd.f32 %v369_v26, %v5849_v15 }
  0xfe   : > { %v5853_v17 = vpop.trf.xlu0  ;;  %v5861_v21 = vpop.trf.xlu1 }
  0xff   : > { %v371_v30 = vadd.f32 %v370_v29, %v5853_v17 }
 0x102   : > { %v5857_v19 = vpop.trf.xlu0  ;;  %v5865_v23 = vpop.trf.xlu1 }
 0x103   : > { %v372_v32 = vadd.f32 %v371_v30, %v5857_v19 }
 0x106   : > { %v5859_v20 = vpop.trf.xlu0  ;;  %v5874_v28 = vpop.trf.xlu1 }
 0x107   : > { %v373_v34 = vadd.f32 %v372_v32, %v5859_v20 }
 0x10a   : > { %v5863_v22 = vpop.trf.xlu0  ;;  %v5881_v33 = vpop.trf.xlu1 }
 0x10b   : > { %v374_v36 = vadd.f32 %v373_v34, %v5863_v22 }
 0x10e   : > { %v5867_v24 = vpop.trf.xlu0  ;;  %v5890_v39 = vpop.trf.xlu1 }
 0x10f   : > { %v375_v37 = vadd.f32 %v374_v36, %v5867_v24 }
 0x112   : > { %v5872_v27 = vpop.trf.xlu0  ;;  %v5897_v44 = vpop.trf.xlu1 }
 0x113   : > { %v376_v40 = vadd.f32 %v375_v37, %v5872_v27 }
 0x116   : > { %v5878_v31 = vpop.trf.xlu0  ;;  %v5906_v50 = vpop.trf.xlu1 }
 0x117   : > { %v377_v41 = vadd.f32 %v376_v40, %v5878_v31 }
 0x11a   : > { %v5884_v35 = vpop.trf.xlu0  ;;  %v5911_v54 = vpop.trf.xlu1 }
 0x11b   : > { %v378_v43 = vadd.f32 %v377_v41, %v5884_v35  ;;  %v661_v41 = vld [vmem:[#allocation8 + $0x10] sm:$0xff] }
 0x11e   : > { %v5888_v38 = vpop.trf.xlu0  ;;  %v5916_v58 = vpop.trf.xlu1 }
 0x11f   : > { %v379_v45 = vadd.f32 %v378_v43, %v5888_v38  ;;  %v662_v43 = vld [vmem:[#allocation8 + $0x18] sm:$0xff] }
 0x122   : > { %v5894_v42 = vpop.trf.xlu0  ;;  %v5921_v1 = vpop.trf.xlu1 }
 0x123   : > { %v380_v47 = vadd.f32 %v379_v45, %v5894_v42 }
 0x126   : > { %v5900_v46 = vpop.trf.xlu0  ;;  %v5926_v7 = vpop.trf.xlu1 }
 0x127   : > { %v381_v48 = vadd.f32 %v380_v47, %v5900_v46 }
 0x12a   : > { %v5904_v49 = vpop.trf.xlu0  ;;  %v5931_v29 = vpop.trf.xlu1 }
 0x12b   : > { %v382_v51 = vadd.f32 %v381_v48, %v5904_v49  ;;  %v4651_v48 = vpack.c.bf16 %v662_v43, %v661_v41  ;;  %v672_v41 = vld [vmem:[#allocation8 + $0x68] sm:$0xff]  ;;  %v1805_v43 = vld [vmem:[#allocation8 + $0x270] sm:$0xff] }
 0x12d   : > { %v383_v52 = vadd.f32 %v382_v51, %v5841_v11  ;;  %v663_v51 = vld [vmem:[#allocation8 + $0x20] sm:$0xff] }
 0x12f   : > { %v384_v53 = vadd.f32 %v383_v52, %v5845_v13  ;;  %v664_v52 = vld [vmem:[#allocation8 + $0x28] sm:$0xff] }
 0x131   : > { %v385_v55 = vadd.f32 %v384_v53, %v5851_v16  ;;  %v4655_v53 = vpack.c.bf16 %v664_v52, %v663_v51  ;;  %v673_v51 = vld [vmem:[#allocation8 + $0x70] sm:$0xff]  ;;  %v674_v52 = vld [vmem:[#allocation8 + $0x78] sm:$0xff] }
 0x133   : > { %v386_v56 = vadd.f32 %v385_v55, %v5855_v18  ;;  %v665_v55 = vld [vmem:[#allocation8 + $0x30] sm:$0xff] }
 0x135   : > { %v387_v57 = vadd.f32 %v386_v56, %v5861_v21  ;;  %v666_v56 = vld [vmem:[#allocation8 + $0x38] sm:$0xff] }
 0x137   : > { %v388_v59 = vadd.f32 %v387_v57, %v5865_v23  ;;  %v4659_v57 = vpack.c.bf16 %v666_v56, %v665_v55  ;;  %v2065_v55 = vld [vmem:[#allocation8 + $0x380] sm:$0xff]  ;;  %v2066_v56 = vld [vmem:[#allocation8 + $0x388] sm:$0xff] }
 0x139   : > { %v389_v61 = vadd.f32 %v388_v59, %v5874_v28  ;;  %v667_v59 = vld [vmem:[#allocation8 + $0x40] sm:$0xff] }
 0x13b   : > { %v390_v62 = vadd.f32 %v389_v61, %v5881_v33  ;;  %v668_v61 = vld [vmem:[#allocation8 + $0x48] sm:$0xff] }
 0x13d   : > { %v391_v2 = vadd.f32 %v390_v62, %v5890_v39  ;;  %v4663_v62 = vpack.c.bf16 %v668_v61, %v667_v59  ;;  %v933_v59 = vld [vmem:[#allocation8 + $0x180] sm:$0xff]  ;;  %v934_v61 = vld [vmem:[#allocation8 + $0x188] sm:$0xff] }
 0x13f   : > { %v392_v4 = vadd.f32 %v391_v2, %v5897_v44  ;;  %v1799_v2 = vld [vmem:[#allocation8 + $0x240] sm:$0xff] }
 0x141   : > { %v393_v5 = vadd.f32 %v392_v4, %v5906_v50  ;;  %v1800_v4 = vld [vmem:[#allocation8 + $0x248] sm:$0xff] }
 0x143   : > { %v394_v8 = vadd.f32 %v393_v5, %v5911_v54  ;;  %v1801_v5 = vld [vmem:[#allocation8 + $0x250] sm:$0xff] }
 0x145   : > { %v395_v25 = vadd.f32 %v394_v8, %v5916_v58  ;;  %v1802_v8 = vld [vmem:[#allocation8 + $0x258] sm:$0xff] }
 0x147   : > { %v396_v26 = vadd.f32 %v395_v25, %v5921_v1  ;;  %v5941_v25 = vpack.c.bf16 %v1802_v8, %v1801_v5  ;;  %v937_v8 = vld [vmem:[#allocation8 + $0x1a0] sm:$0xff] }
 0x149   : > { %v397_v30 = vadd.f32 %v396_v26, %v5926_v7  ;;  %6750 = vst [vmem:[#allocation18_spill] sm:$0xff] %v5941_v25  ;;  %v669_v26 = vld [vmem:[#allocation8 + $0x50] sm:$0xff] }
 0x14b   : > { %v398_v32 = vadd.f32 %v397_v30, %v5931_v29  ;;  %v670_v30 = vld [vmem:[#allocation8 + $0x58] sm:$0xff] }
 0x14d   : > { %v399_v34 = vrot.slane %v398_v32, 4 }
 0x14f   : > { %v400_v36 = vadd.f32 %v399_v34, %v398_v32  ;;  %v1803_v32 = vld [vmem:[#allocation8 + $0x260] sm:$0xff]  ;;  %v4667_v34 = vpack.c.bf16 %v670_v30, %v669_v26  ;;  %v938_v26 = vld [vmem:[#allocation8 + $0x1a8] sm:$0xff] }
 0x150   : > { %v4687_v30 = vpack.c.bf16 %v938_v26, %v937_v8  ;;  %v421_v8 = vld [vmem:[%s6710_s2] sm:$0x1] }
 0x151   : > { %v401_v37 = vrot.slane %v400_v36, 2 }
 0x153   : > { %v402_v40 = vadd.f32 %v401_v37, %v400_v36  ;;  %v1804_v36 = vld [vmem:[#allocation8 + $0x268] sm:$0xff] }
 0x154   : > { %v5945_v37 = vpack.c.bf16 %v1804_v36, %v1803_v32  ;;  %v939_v32 = vld [vmem:[#allocation8 + $0x1b0] sm:$0xff] }
 0x155   : > { %v403_v45 = vrot.slane %v402_v40, 1 }
 0x156   : > { %6751 = vst [vmem:[#allocation19_spill] sm:$0xff] %v5945_v37 }
 0x157   : > { %v404_v47 = vadd.f32 %v403_v45, %v402_v40  ;;  %v671_v40 = vld [vmem:[#allocation8 + $0x60] sm:$0xff] }
 0x158   : > { %v4671_v45 = vpack.c.bf16 %v672_v41, %v671_v40  ;;  %v942_v40 = vld [vmem:[#allocation8 + $0x1c8] sm:$0xff] }
 0x159   : > { %3901 = vmatmul.mubr.f32.vlgmr.msra.gmra.mrb[0].mxu0 %v404_v47  ;;  %v1806_v47 = vld [vmem:[#allocation8 + $0x278] sm:$0xff] }
 0x15a   : > { %4650 = vmatpush3.bf16.msra.mxu0 %v5820_v60  ;;  %3935 = vmatprep.mubr.f32.mxu0 %v5509_v0  ;;  %v5937_v60 = vpack.c.bf16 %v1800_v4, %v1799_v2  ;;  %v935_v2 = vld [vmem:[#allocation8 + $0x190] sm:$0xff]  ;;  %v936_v4 = vld [vmem:[#allocation8 + $0x198] sm:$0xff] }
 0x15b   : > { %4652 = vmatprep.subr.bf16.mxu0 %v4651_v48  ;;  %v4683_v5 = vpack.c.bf16 %v936_v4, %v935_v2  ;;  %v547_v4 = vlaneseq }
 0x15c   : > { %6749 = vst [vmem:[#allocation17_spill] sm:$0xff] %v5937_v60  ;;  %4939 = vmatprep.subr.bf16.mxu1 %v5937_v60 }
 0x15d   : > { %4947 = vmatpush3.bf16.msra.mxu1 %v5937_v60  ;;  %v2380_v60 = vld [vmem:[#allocation8 + $0x128] sm:$0xff] }
 0x15e   : > { %4654 = vmatpush3.bf16.msra.mxu0 %v4651_v48  ;;  %4940 = vmatprep.subr.bf16.mxu1 %v5941_v25  ;;  %v5949_v48 = vpack.c.bf16 %v1806_v47, %v1805_v43  ;;  %v943_v43 = vld [vmem:[#allocation8 + $0x1d0] sm:$0xff] }
 0x15f   : > { %4656 = vmatprep.subr.bf16.mxu0 %v4655_v53 }
 0x160   : > { %6752 = vst [vmem:[#allocation20_spill] sm:$0xff] %v5949_v48 }
 0x161   : > { %4948 = vmatpush3.bf16.msra.mxu1 %v5941_v25  ;;  %v2379_v25 = vld [vmem:[#allocation8 + $0x120] sm:$0xff] }
 0x162   : > { %4658 = vmatpush3.bf16.msra.mxu0 %v4655_v53  ;;  %4941 = vmatprep.subr.bf16.mxu1 %v5945_v37  ;;  %v4675_v53 = vpack.c.bf16 %v674_v52, %v673_v51  ;;  %v945_v51 = vld [vmem:[#allocation8 + $0x1e0] sm:$0xff]  ;;  %v946_v52 = vld [vmem:[#allocation8 + $0x1e8] sm:$0xff] }
 0x163   : > { %4660 = vmatprep.subr.bf16.mxu0 %v4659_v57 }
 0x165   : > { %4949 = vmatpush3.bf16.msra.mxu1 %v5945_v37 }
 0x166   : > { %4662 = vmatpush3.bf16.msra.mxu0 %v4659_v57  ;;  %4942 = vmatprep.subr.bf16.mxu1 %v5949_v48  ;;  %v5953_v57 = vpack.c.bf16 %v2066_v56, %v2065_v55  ;;  %v947_v55 = vld [vmem:[#allocation8 + $0x1f0] sm:$0xff]  ;;  %v948_v56 = vld [vmem:[#allocation8 + $0x1f8] sm:$0xff] }
 0x167   : > { %4664 = vmatprep.subr.bf16.mxu0 %v4663_v62 }
 0x169   : > { %4950 = vmatpush3.bf16.msra.mxu1 %v5949_v48 }
 0x16a   : > { %4666 = vmatpush3.bf16.msra.mxu0 %v4663_v62  ;;  %4808 = vmatprep.subr.bf16.mxu1 %v5953_v57  ;;  %v4679_v62 = vpack.c.bf16 %v934_v61, %v933_v59  ;;  %v4707_v59 = vpack.c.bf16 %v948_v56, %v947_v55  ;;  %v1207_v61 = vld [vmem:[#allocation8 + $0x300] sm:$0xff] }
 0x16b   : > { %4668 = vmatprep.subr.bf16.mxu0 %v4667_v34 }
 0x16e   : > { %4670 = vmatpush3.bf16.msra.mxu0 %v4667_v34  ;;  %v940_v34 = vld [vmem:[#allocation8 + $0x1b8] sm:$0xff] }
 0x16f   : > { %4672 = vmatprep.subr.bf16.mxu0 %v4671_v45  ;;  %v4691_v36 = vpack.c.bf16 %v940_v34, %v939_v32 }
 0x172   : > { %4674 = vmatpush3.bf16.msra.mxu0 %v4671_v45  ;;  %v944_v45 = vld [vmem:[#allocation8 + $0x1d8] sm:$0xff] }
 0x173   : > { %4676 = vmatprep.subr.bf16.mxu0 %v4675_v53  ;;  %v4699_v47 = vpack.c.bf16 %v944_v45, %v943_v43 }
 0x176   : > { %4678 = vmatpush3.bf16.msra.mxu0 %v4675_v53  ;;  %v4703_v53 = vpack.c.bf16 %v946_v52, %v945_v51 }
 0x177   : > { %4680 = vmatprep.subr.bf16.mxu0 %v4679_v62 }
 0x179   : > { %3936 = vmatmul.mubr.f32.vlgmr.msra.gmra.mrb[2].mxu0 %v5509_v0  ;;  %v941_v0 = vld [vmem:[#allocation8 + $0x1c0] sm:$0xff] }
 0x17a   : > { %4682 = vmatpush3.bf16.msra.mxu0 %v4679_v62  ;;  %v4695_v41 = vpack.c.bf16 %v942_v40, %v941_v0  ;;  %v1208_v62 = vld [vmem:[#allocation8 + $0x308] sm:$0xff]  ;;  %v2067_v0 = vld [vmem:[#allocation8 + $0x390] sm:$0xff]  ;;  %v2068_v40 = vld [vmem:[#allocation8 + $0x398] sm:$0xff] }
 0x17b   : > { %4684 = vmatprep.subr.bf16.mxu0 %v4683_v5  ;;  %v5957_v2 = vpack.c.bf16 %v1208_v62, %v1207_v61  ;;  %v5963_v43 = vpack.c.bf16 %v2068_v40, %v2067_v0  ;;  %v2073_v61 = vld [vmem:[#allocation8 + $0x3c0] sm:$0xff]  ;;  %v2074_v62 = vld [vmem:[#allocation8 + $0x3c8] sm:$0xff] }
 0x17c   : > { %v2077_v0 = vld [vmem:[#allocation8 + $0x3e0] sm:$0xff]  ;;  %v2078_v40 = vld [vmem:[#allocation8 + $0x3e8] sm:$0xff] }
 0x17e   : > { %4686 = vmatpush3.bf16.msra.mxu0 %v4683_v5  ;;  %v548_v5 = vshrl.u32 %v547_v4, 7 }
 0x17f   : > { %4688 = vmatprep.subr.bf16.mxu0 %v4687_v30 }
 0x180   : > { %v549_v32 = vsub.s32 0, %v548_v5 }
 0x182   : > { %4690 = vmatpush3.bf16.msra.mxu0 %v4687_v30 }
 0x183   : > { %4692 = vmatprep.subr.bf16.mxu0 %v4691_v36 }
 0x186   : > { %4694 = vmatpush3.bf16.msra.mxu0 %v4691_v36 }
 0x187   : > { %4696 = vmatprep.subr.bf16.mxu0 %v4695_v41 }
 0x18a   : > { %4698 = vmatpush3.bf16.msra.mxu0 %v4695_v41 }
 0x18b   : > { %4700 = vmatprep.subr.bf16.mxu0 %v4699_v47 }
 0x18e   : > { %4702 = vmatpush3.bf16.msra.mxu0 %v4699_v47 }
 0x18f   : > { %4704 = vmatprep.subr.bf16.mxu0 %v4703_v53 }
 0x192   : > { %4706 = vmatpush3.bf16.msra.mxu0 %v4703_v53 }
 0x193   : > { %4708 = vmatprep.subr.bf16.mxu0 %v4707_v59 }
 0x196   : > { %4710 = vmatpush3.bf16.msra.mxu0 %v4707_v59 }
 0x197   : > { %4712 = vmatprep.subr.bf16.mxu0 %v5957_v2 }
 0x22c   : > { %v488_v26 = vpop.f32.mrb[0].mxu0 }
 0x22d   : > { %v489_v30 = vadd.f32 %v488_v26, %v421_v8  ;;  %v3902_v34 = vpop.f32.mrb[1].mxu0  ;;  %v4823_v8 = vpack.c.bf16 %v2074_v62, %v2073_v61  ;;  %v2075_v26 = vld [vmem:[#allocation8 + $0x3d0] sm:$0xff] }
 0x22f   : > { %v492_v36 = vmax.f32 %v489_v30, 0.0  ;;  %v2076_v30 = vld [vmem:[#allocation8 + $0x3d8] sm:$0xff] }
 0x231   : > { %v550_v41 = vrot.slane %v492_v36, %v549_v32  ;;  %v4827_v36 = vpack.c.bf16 %v2076_v30, %v2075_v26 }
 0x233   : > { %v551_v45 = vadd.f32 %v550_v41, %v5839_v10  ;;  %v552_v47 = vadd.f32 %v550_v41, %v5843_v12  ;;  %v5968_v51 = vadd.f32 %v550_v41, %v5847_v14  ;;  %v5971_v52 = vadd.f32 %v550_v41, %v5849_v15 }
 0x234   : > { %v5974_v53 = vadd.f32 %v550_v41, %v5853_v17  ;;  %v5977_v55 = vadd.f32 %v550_v41, %v5857_v19  ;;  %v5980_v56 = vadd.f32 %v550_v41, %v5859_v20  ;;  %v5983_v59 = vadd.f32 %v550_v41, %v5863_v22 }
 0x235   : > { %v5986_v10 = vadd.f32 %v550_v41, %v5867_v24  ;;  %v5989_v12 = vadd.f32 %v550_v41, %v5872_v27  ;;  %v5992_v14 = vadd.f32 %v550_v41, %v5878_v31  ;;  %v5995_v15 = vadd.f32 %v550_v41, %v5884_v35  ;;  %584 = vst [vmem:[#allocation2 + $0x19] sm:$0xff] %v551_v45 }
 0x236   : > { %585 = vst [vmem:[#allocation2 + $0x21] sm:$0xff] %v552_v47  ;;  %586 = vst [vmem:[#allocation2 + $0x31] sm:$0xff] %v5968_v51  ;;  %v6000_v17 = vadd.f32 %v550_v41, %v5888_v38  ;;  %v6003_v19 = vadd.f32 %v550_v41, %v5894_v42  ;;  %v6006_v20 = vadd.f32 %v550_v41, %v5900_v46  ;;  %v2070_v38 = vld [vmem:[#allocation8 + $0x3a8] sm:$0xff]  ;;  %v2079_v47 = vld [vmem:[#allocation8 + $0x3f0] sm:$0xff] }
 0x237   : > { %587 = vst [vmem:[#allocation2 + $0x39] sm:$0xff] %v5971_v52  ;;  %v6009_v22 = vadd.f32 %v550_v41, %v5904_v49  ;;  %588 = vst [vmem:[#allocation2 + $0x49] sm:$0xff] %v5974_v53  ;;  %v6016_v24 = vadd.f32 %v550_v41, %v5841_v11  ;;  %v6019_v27 = vadd.f32 %v550_v41, %v5845_v13  ;;  %4267 = vmatprep.mubr.f32.mxu1 %v5986_v10 }
 0x238   : > { %589 = vst [vmem:[#allocation2 + $0x51] sm:$0xff] %v5977_v55  ;;  %590 = vst [vmem:[#allocation2 + $0x61] sm:$0xff] %v5980_v56  ;;  %v6022_v31 = vadd.f32 %v550_v41, %v5851_v16  ;;  %v6025_v35 = vadd.f32 %v550_v41, %v5855_v18  ;;  %v6033_v11 = vadd.f32 %v550_v41, %v5861_v21  ;;  %4268 = vmatmul.mubr.f32.vlgmr.msra.gmra.mrb[0].mxu1 %v5989_v12  ;;  %v2069_v21 = vld [vmem:[#allocation8 + $0x3a0] sm:$0xff] }
 0x239   : > { %591 = vst [vmem:[#allocation2 + $0x69] sm:$0xff] %v5983_v59  ;;  %592 = vst [vmem:[#allocation2 + $0x79] sm:$0xff] %v5986_v10  ;;  %v6036_v13 = vadd.f32 %v550_v41, %v5865_v23  ;;  %v6039_v16 = vadd.f32 %v550_v41, %v5874_v28  ;;  %v6042_v18 = vadd.f32 %v550_v41, %v5881_v33  ;;  %4810 = vmatpush3.bf16.msra.mxu1 %v5953_v57 }
 0x23a   : > { %593 = vst [vmem:[#allocation2 + $0x81] sm:$0xff] %v5989_v12  ;;  %594 = vst [vmem:[#allocation2 + $0x91] sm:$0xff] %v5992_v14  ;;  %v6050_v23 = vadd.f32 %v550_v41, %v5890_v39  ;;  %v6053_v28 = vadd.f32 %v550_v41, %v5897_v44  ;;  %v6056_v33 = vadd.f32 %v550_v41, %v5906_v50  ;;  %4270 = vmatprep.mubr.f32.mxu1 %v5992_v14 }
 0x23b   : > { %595 = vst [vmem:[#allocation2 + $0x99] sm:$0xff] %v5995_v15  ;;  %596 = vst [vmem:[#allocation2 + $0xa9] sm:$0xff] %v6000_v17  ;;  %v6059_v42 = vadd.f32 %v550_v41, %v5911_v54  ;;  %v6067_v39 = vadd.f32 %v550_v41, %v5916_v58  ;;  %v6070_v44 = vadd.f32 %v550_v41, %v5921_v1  ;;  %4812 = vmatprep.subr.bf16.mxu1 %v5963_v43  ;;  %v2071_v54 = vld [vmem:[#allocation8 + $0x3b0] sm:$0xff] }
 0x23c   : > { %597 = vst [vmem:[#allocation2 + $0xb1] sm:$0xff] %v6003_v19  ;;  %598 = vst [vmem:[#allocation2 + $0xc1] sm:$0xff] %v6006_v20  ;;  %v6073_v46 = vadd.f32 %v550_v41, %v5926_v7  ;;  %v6076_v49 = vadd.f32 %v550_v41, %v5931_v29  ;;  %v4815_v50 = vpack.c.bf16 %v2070_v38, %v2069_v21  ;;  %v6092_v58 = vld [vmem:[#allocation2 + $0x18] sm:$0xff]  ;;  %4271 = vmatmul.mubr.f32.gmra.mrb[2].mxu1 %v5995_v15  ;;  %v2072_v7 = vld [vmem:[#allocation8 + $0x3b8] sm:$0xff] }
 0x23d   : > { %599 = vst [vmem:[#allocation2 + $0xc9] sm:$0xff] %v6009_v22  ;;  %600 = vst [vmem:[#allocation2 + $0xd9] sm:$0xff] %v6016_v24  ;;  %v6094_v1 = vld [vmem:[#allocation2 + $0x20] sm:$0xff]  ;;  %3938 = vmatprep.mubr.f32.mxu0 %v6092_v58  ;;  %4273 = vmatprep.mubr.f32.mxu1 %v6000_v17  ;;  %v6100_v29 = vld [vmem:[#allocation2 + $0x30] sm:$0xff]  ;;  %v4819_v57 = vpack.c.bf16 %v2072_v7, %v2071_v54  ;;  %v4831_v45 = vpack.c.bf16 %v2078_v40, %v2077_v0 }
 0x23e   : > { %601 = vst [vmem:[#allocation2 + $0xe1] sm:$0xff] %v6019_v27  ;;  %602 = vst [vmem:[#allocation2 + $0xf1] sm:$0xff] %v6022_v31  ;;  %3939 = vmatmul.mubr.f32.gmra.mrb[4].mxu0 %v6094_v1  ;;  %4814 = vmatpush3.bf16.msra.mxu1 %v5963_v43  ;;  %v6105_v4 = vld [vmem:[#allocation2 + $0x38] sm:$0xff]  ;;  %v6109_v5 = vld [vmem:[#allocation2 + $0x48] sm:$0xff] }
 0x23f   : > { %603 = vst [vmem:[#allocation2 + $0xf9] sm:$0xff] %v6025_v35  ;;  %604 = vst [vmem:[#allocation2 + $0x109] sm:$0xff] %v6033_v11  ;;  %3941 = vmatprep.mubr.f32.mxu0 %v6100_v29  ;;  %4816 = vmatprep.subr.bf16.mxu1 %v4815_v50  ;;  %v6113_v32 = vld [vmem:[#allocation2 + $0x50] sm:$0xff]  ;;  %v6117_v34 = vld [vmem:[#allocation2 + $0x60] sm:$0xff] }
 0x240   : > { %605 = vst [vmem:[#allocation2 + $0x111] sm:$0xff] %v6036_v13  ;;  %606 = vst [vmem:[#allocation2 + $0x121] sm:$0xff] %v6039_v16  ;;  %4274 = vmatmul.mubr.f32.gmra.mrb[4].mxu1 %v6003_v19  ;;  %v6121_v41 = vld [vmem:[#allocation2 + $0x68] sm:$0xff]  ;;  %v6125_v43 = vld [vmem:[#allocation2 + $0x78] sm:$0xff] }
 0x241   : > { %607 = vst [vmem:[#allocation2 + $0x129] sm:$0xff] %v6042_v18  ;;  %608 = vst [vmem:[#allocation2 + $0x139] sm:$0xff] %v6050_v23  ;;  %4276 = vmatprep.mubr.f32.mxu1 %v6006_v20  ;;  %v2080_v21 = vld [vmem:[#allocation8 + $0x3f8] sm:$0xff]  ;;  %v6129_v38 = vld [vmem:[#allocation2 + $0x80] sm:$0xff] }
 0x242   : > { %609 = vst [vmem:[#allocation2 + $0x141] sm:$0xff] %v6053_v28  ;;  %610 = vst [vmem:[#allocation2 + $0x151] sm:$0xff] %v6056_v33  ;;  %3942 = vmatmul.mubr.f32.gmra.mrb[6].mxu0 %v6105_v4  ;;  %4818 = vmatpush3.bf16.msra.mxu1 %v4815_v50  ;;  %v6133_v50 = vld [vmem:[#allocation2 + $0x90] sm:$0xff]  ;;  %v4835_v54 = vpack.c.bf16 %v2080_v21, %v2079_v47  ;;  %v6137_v61 = vld [vmem:[#allocation2 + $0x98] sm:$0xff] }
 0x243   : > { %611 = vst [vmem:[#allocation2 + $0x159] sm:$0xff] %v6059_v42  ;;  %612 = vst [vmem:[#allocation2 + $0x169] sm:$0xff] %v6067_v39  ;;  %3944 = vmatprep.mubr.f32.mxu0 %v6109_v5  ;;  %4820 = vmatprep.subr.bf16.mxu1 %v4819_v57  ;;  %v2375_v7 = vld [vmem:[#allocation8 + $0x100] sm:$0xff]  ;;  %v6141_v62 = vld [vmem:[#allocation2 + $0xa8] sm:$0xff] }
 0x244   : > { %613 = vst [vmem:[#allocation2 + $0x171] sm:$0xff] %v6070_v44  ;;  %614 = vst [vmem:[#allocation2 + $0x181] sm:$0xff] %v6073_v46  ;;  %4277 = vmatmul.mubr.f32.gmra.mrb[6].mxu1 %v6009_v22  ;;  %v6145_v26 = vld [vmem:[#allocation2 + $0xb0] sm:$0xff]  ;;  %v6149_v30 = vld [vmem:[#allocation2 + $0xc0] sm:$0xff] }
 0x245   : > { %615 = vst [vmem:[#allocation2 + $0x189] sm:$0xff] %v6076_v49  ;;  %4279 = vmatprep.mubr.f32.mxu1 %v6016_v24  ;;  %v6157_v0 = vld [vmem:[#allocation2 + $0xd8] sm:$0xff]  ;;  %v6161_v40 = vld [vmem:[#allocation2 + $0xe0] sm:$0xff] }
 0x246   : > { %3945 = vmatmul.mubr.f32.gmra.mrb[8].mxu0 %v6113_v32  ;;  %4822 = vmatpush3.bf16.msra.mxu1 %v4819_v57  ;;  %v2376_v57 = vld [vmem:[#allocation8 + $0x108] sm:$0xff]  ;;  %v6173_v21 = vld [vmem:[#allocation2 + $0x108] sm:$0xff] }
 0x247   : > { %3947 = vmatprep.mubr.f32.mxu0 %v6117_v34  ;;  %4824 = vmatprep.subr.bf16.mxu1 %v4823_v8  ;;  %v6169_v47 = vld [vmem:[#allocation2 + $0xf8] sm:$0xff]  ;;  %v6181_v48 = vld [vmem:[#allocation2 + $0x120] sm:$0xff] }
 0x248   : > { %4280 = vmatmul.mubr.f32.gmra.mrb[8].mxu1 %v6019_v27  ;;  %v6185_v9 = vld [vmem:[#allocation2 + $0x128] sm:$0xff]  ;;  %v6189_v6 = vld [vmem:[#allocation2 + $0x138] sm:$0xff] }
 0x249   : > { %4282 = vmatprep.mubr.f32.mxu1 %v6022_v31  ;;  %v6193_v3 = vld [vmem:[#allocation2 + $0x140] sm:$0xff] }
 0x24a   : > { %3948 = vmatmul.mubr.f32.gmra.mrb[10].mxu0 %v6121_v41  ;;  %4826 = vmatpush3.bf16.msra.mxu1 %v4823_v8  ;;  %v4839_v8 = vpack.c.bf16 %v2376_v57, %v2375_v7  ;;  %v2378_v7 = vld [vmem:[#allocation8 + $0x118] sm:$0xff]  ;;  %v6177_v57 = vld [vmem:[#allocation2 + $0x110] sm:$0xff] }
 0x24b   : > { %3950 = vmatprep.mubr.f32.mxu0 %v6125_v43  ;;  %4828 = vmatprep.subr.bf16.mxu1 %v4827_v36 }
 0x24c   : > { %4283 = vmatmul.mubr.f32.gmra.mrb[10].mxu1 %v6025_v35 }
 0x24d   : > { %4285 = vmatprep.mubr.f32.mxu1 %v6033_v11 }
 0x24e   : > { %3951 = vmatmul.mubr.f32.gmra.mrb[12].mxu0 %v6129_v38  ;;  %4830 = vmatpush3.bf16.msra.mxu1 %v4827_v36  ;;  %v6153_v36 = vld [vmem:[#allocation2 + $0xc8] sm:$0xff] }
 0x24f   : > { %3953 = vmatprep.mubr.f32.mxu0 %v6133_v50  ;;  %4832 = vmatprep.subr.bf16.mxu1 %v4831_v45 }
 0x250   : > { %4286 = vmatmul.mubr.f32.gmra.mrb[12].mxu1 %v6036_v13 }
 0x251   : > { %4288 = vmatprep.mubr.f32.mxu1 %v6039_v16 }
 0x252   : > { %3954 = vmatmul.mubr.f32.gmra.mrb[14].mxu0 %v6137_v61  ;;  %4834 = vmatpush3.bf16.msra.mxu1 %v4831_v45  ;;  %v6165_v45 = vld [vmem:[#allocation2 + $0xf0] sm:$0xff] }
 0x253   : > { %3956 = vmatprep.mubr.f32.mxu0 %v6141_v62  ;;  %4836 = vmatprep.subr.bf16.mxu1 %v4835_v54 }
 0x254   : > { %4289 = vmatmul.mubr.f32.gmra.mrb[14].mxu1 %v6042_v18 }
 0x255   : > { %4291 = vmatprep.mubr.f32.mxu1 %v6050_v23 }
 0x256   : > { %3957 = vmatmul.mubr.f32.gmra.mrb[16].mxu0 %v6145_v26  ;;  %4838 = vmatpush3.bf16.msra.mxu1 %v4835_v54  ;;  %v2377_v54 = vld [vmem:[#allocation8 + $0x110] sm:$0xff] }
 0x257   : > { %3959 = vmatprep.mubr.f32.mxu0 %v6149_v30  ;;  %4840 = vmatprep.subr.bf16.mxu1 %v4839_v8  ;;  %v4843_v37 = vpack.c.bf16 %v2378_v7, %v2377_v54  ;;  %v2381_v54 = vld [vmem:[#allocation8 + $0x130] sm:$0xff]  ;;  %v2382_v7 = vld [vmem:[#allocation8 + $0x138] sm:$0xff] }
 0x258   : > { %4292 = vmatmul.mubr.f32.gmra.mrb[16].mxu1 %v6053_v28 }
 0x259   : > { %4294 = vmatprep.mubr.f32.mxu1 %v6056_v33 }
 0x25a   : > { %3960 = vmatmul.mubr.f32.gmra.mrb[18].mxu0 %v6153_v36 }
 0x25b   : > { %3962 = vmatprep.mubr.f32.mxu0 %v6157_v0 }
 0x25c   : > { %4295 = vmatmul.mubr.f32.gmra.mrb[18].mxu1 %v6059_v42 }
 0x25d   : > { %4297 = vmatprep.mubr.f32.mxu1 %v6067_v39 }
 0x25e   : > { %3963 = vmatmul.mubr.f32.gmra.mrb[20].mxu0 %v6161_v40 }
 0x25f   : > { %3965 = vmatprep.mubr.f32.mxu0 %v6165_v45 }
 0x260   : > { %4298 = vmatmul.mubr.f32.gmra.mrb[20].mxu1 %v6070_v44 }
 0x261   : > { %4300 = vmatprep.mubr.f32.mxu1 %v6073_v46 }
 0x262   : > { %3966 = vmatmul.mubr.f32.gmra.mrb[22].mxu0 %v6169_v47 }
 0x263   : > { %3968 = vmatprep.mubr.f32.mxu0 %v6173_v21 }
 0x264   : > { %4301 = vmatmul.mubr.f32.gmra.mrb[22].mxu1 %v6076_v49 }
 0x265   : > { %4335 = vmatprep.mubr.f32.mxu1 %v5968_v51  ;;  %v4847_v51 = vpack.c.bf16 %v2380_v60, %v2379_v25  ;;  %v2383_v60 = vld [vmem:[#allocation8 + $0x140] sm:$0xff]  ;;  %v2384_v25 = vld [vmem:[#allocation8 + $0x148] sm:$0xff] }
 0x266   : > { %3969 = vmatmul.mubr.f32.gmra.mrb[24].mxu0 %v6177_v57 }
 0x267   : > { %3971 = vmatprep.mubr.f32.mxu0 %v6181_v48 }
 0x268   : > { %4336 = vmatmul.mubr.f32.vlgmr.msra.gmra.mrb[24].mxu1 %v5971_v52  ;;  %v6197_v52 = vld [vmem:[#allocation2 + $0x150] sm:$0xff] }
 0x269   : > { %4842 = vmatpush3.bf16.msra.mxu1 %v4839_v8  ;;  %4338 = vmatprep.mubr.f32.mxu1 %v5974_v53  ;;  %v4851_v53 = vpack.c.bf16 %v2382_v7, %v2381_v54  ;;  %v6201_v8 = vld [vmem:[#allocation2 + $0x158] sm:$0xff]  ;;  %v2386_v54 = vld [vmem:[#allocation8 + $0x158] sm:$0xff]  ;;  %v6209_v7 = vld [vmem:[#allocation2 + $0x170] sm:$0xff] }
 0x26a   : > { %3972 = vmatmul.mubr.f32.gmra.mrb[26].mxu0 %v6185_v9  ;;  %4844 = vmatprep.subr.bf16.mxu1 %v4843_v37 }
 0x26b   : > { %3974 = vmatprep.mubr.f32.mxu0 %v6189_v6 }
 0x26c   : > { %4339 = vmatmul.mubr.f32.gmra.mrb[26].mxu1 %v5977_v55  ;;  %v4855_v55 = vpack.c.bf16 %v2384_v25, %v2383_v60  ;;  %v2387_v60 = vld [vmem:[#allocation8 + $0x160] sm:$0xff]  ;;  %v2388_v25 = vld [vmem:[#allocation8 + $0x168] sm:$0xff] }
 0x26d   : > { %4341 = vmatprep.mubr.f32.mxu1 %v5980_v56  ;;  %4846 = vmatpush3.bf16.msra.mxu1 %v4843_v37  ;;  %v6205_v37 = vld [vmem:[#allocation2 + $0x168] sm:$0xff]  ;;  %v2385_v56 = vld [vmem:[#allocation8 + $0x150] sm:$0xff] }
 0x26e   : > { %3975 = vmatmul.mubr.f32.gmra.mrb[28].mxu0 %v6193_v3  ;;  %4848 = vmatprep.subr.bf16.mxu1 %v4847_v51  ;;  %6753 = vst [vmem:[#allocation21_spill] sm:$0xff] %v6205_v37 }
 0x26f   : > { %3977 = vmatprep.mubr.f32.mxu0 %v6197_v52 }
 0x270   : > { %4342 = vmatmul.mubr.f32.gmra.mrb[28].mxu1 %v5983_v59  ;;  %v1209_v59 = vld [vmem:[#allocation8 + $0x310] sm:$0xff] }
 0x271   : > { %4344 = vmatprep.mubr.f32.mxu1 %v5986_v10  ;;  %4850 = vmatpush3.bf16.msra.mxu1 %v4847_v51  ;;  %v1210_v10 = vld [vmem:[#allocation8 + $0x318] sm:$0xff]  ;;  %v4859_v51 = vpack.c.bf16 %v2386_v54, %v2385_v56  ;;  %v2649_v56 = vld [vmem:[#allocation8 + $0x280] sm:$0xff] }
 0x272   : > { %3978 = vmatmul.mubr.f32.gmra.mrb[30].mxu0 %v6201_v8  ;;  %4852 = vmatprep.subr.bf16.mxu1 %v4851_v53  ;;  %v4715_v63 = vpack.c.bf16 %v1210_v10, %v1209_v59  ;;  %v1220_v10 = vld [vmem:[#allocation8 + $0x368] sm:$0xff] }
 0x273   : > { %3980 = vmatprep.mubr.f32.mxu0 %v6205_v37  ;;  %v1212_v37 = vld [vmem:[#allocation8 + $0x328] sm:$0xff] }
 0x274   : > { %4345 = vmatmul.mubr.f32.gmra.mrb[30].mxu1 %v5989_v12  ;;  %v1211_v12 = vld [vmem:[#allocation8 + $0x320] sm:$0xff] }
 0x275   : > { %4347 = vmatprep.mubr.f32.mxu1 %v5992_v14  ;;  %4854 = vmatpush3.bf16.msra.mxu1 %v4851_v53  ;;  %v4863_v14 = vpack.c.bf16 %v2388_v25, %v2387_v60  ;;  %v2389_v53 = vld [vmem:[#allocation8 + $0x170] sm:$0xff]  ;;  %v1222_v60 = vld [vmem:[#allocation8 + $0x378] sm:$0xff]  ;;  %v1518_v25 = vld [vmem:[#allocation8 + $0x88] sm:$0xff] }
 0x276   : > { %3981 = vmatmul.mubr.f32.gmra.mrb[32].mxu0 %v6209_v7  ;;  %4856 = vmatprep.subr.bf16.mxu1 %v4855_v55 }
 0x277   : > { %4015 = vmatprep.mubr.f32.mxu0 %v6092_v58  ;;  %v2390_v58 = vld [vmem:[#allocation8 + $0x178] sm:$0xff] }
 0x278   : > { %4348 = vmatmul.mubr.f32.gmra.mrb[0].mxu1 %v5995_v15  ;;  %v4719_v15 = vpack.c.bf16 %v1212_v37, %v1211_v12  ;;  %v1216_v37 = vld [vmem:[#allocation8 + $0x348] sm:$0xff] }
 0x279   : > { %4350 = vmatprep.mubr.f32.mxu1 %v6000_v17  ;;  %4858 = vmatpush3.bf16.msra.mxu1 %v4855_v55  ;;  %v1213_v17 = vld [vmem:[#allocation8 + $0x330] sm:$0xff]  ;;  %v1214_v55 = vld [vmem:[#allocation8 + $0x338] sm:$0xff] }
 0x27a   : > { %4016 = vmatmul.mubr.f32.vlgmr.msra.gmra.mrb[2].mxu0 %v6094_v1  ;;  %4860 = vmatprep.subr.bf16.mxu1 %v4859_v51  ;;  %v4867_v1 = vpack.c.bf16 %v2390_v58, %v2389_v53  ;;  %v2655_v53 = vld [vmem:[#allocation8 + $0x2b0] sm:$0xff]  ;;  %v2656_v58 = vld [vmem:[#allocation8 + $0x2b8] sm:$0xff] }
 0x27b   : > { %4018 = vmatprep.mubr.f32.mxu0 %v6100_v29  ;;  %4714 = vmatpush3.bf16.msra.mxu0 %v5957_v2  ;;  %v2650_v2 = vld [vmem:[#allocation8 + $0x288] sm:$0xff] }
 0x27c   : > { %4351 = vmatmul.mubr.f32.gmra.mrb[2].mxu1 %v6003_v19  ;;  %4716 = vmatprep.subr.bf16.mxu0 %v4715_v63  ;;  %v4723_v19 = vpack.c.bf16 %v1214_v55, %v1213_v17  ;;  %v6226_v54 = vpack.c.bf16 %v2650_v2, %v2649_v56  ;;  %v4883_v17 = vpack.c.bf16 %v2656_v58, %v2655_v53  ;;  %v6754_v55 = vld [vmem:[#allocation21_spill] sm:$0xff]  ;;  %v2658_v2 = vld [vmem:[#allocation8 + $0x2c8] sm:$0xff] }
 0x27d   : > { %4353 = vmatprep.mubr.f32.mxu1 %v6006_v20  ;;  %4862 = vmatpush3.bf16.msra.mxu1 %v4859_v51  ;;  %v1215_v20 = vld [vmem:[#allocation8 + $0x340] sm:$0xff]  ;;  %v1221_v51 = vld [vmem:[#allocation8 + $0x370] sm:$0xff] }
 0x27e   : > { %4019 = vmatmul.mubr.f32.gmra.mrb[4].mxu0 %v6105_v4  ;;  %4864 = vmatprep.subr.bf16.mxu1 %v4863_v14  ;;  %v2657_v56 = vld [vmem:[#allocation8 + $0x2c0] sm:$0xff] }
 0x27f   : > { %4021 = vmatprep.mubr.f32.mxu0 %v6109_v5  ;;  %4718 = vmatpush3.bf16.msra.mxu0 %v4715_v63  ;;  %v4727_v63 = vpack.c.bf16 %v1216_v37, %v1215_v20  ;;  %v6287_v20 = vld [vmem:[#allocation2 + $0x180] sm:$0xff]  ;;  %v4887_v37 = vpack.c.bf16 %v2658_v2, %v2657_v56  ;;  %v6320_v53 = vld [vmem:[#allocation2 + $0xaa] sm:$0xff]  ;;  %v6327_v56 = vld [vmem:[#allocation2 + $0xb2] sm:$0xff] }
 0x280   : > { %4354 = vmatmul.mubr.f32.gmra.mrb[4].mxu1 %v6009_v22  ;;  %4720 = vmatprep.subr.bf16.mxu0 %v4719_v15  ;;  %v1217_v22 = vld [vmem:[#allocation8 + $0x350] sm:$0xff] }
 0x281   : > { %4356 = vmatprep.mubr.f32.mxu1 %v6016_v24  ;;  %4866 = vmatpush3.bf16.msra.mxu1 %v4863_v14  ;;  %v1218_v24 = vld [vmem:[#allocation8 + $0x358] sm:$0xff] }
 0x282   : > { %4022 = vmatmul.mubr.f32.gmra.mrb[6].mxu0 %v6113_v32  ;;  %4868 = vmatprep.subr.bf16.mxu1 %v4867_v1  ;;  %v4731_v59 = vpack.c.bf16 %v1218_v24, %v1217_v22  ;;  %v6272_v14 = vld [vmem:[#allocation2 + $0x22] sm:$0xff] }
 0x283   : > { %4024 = vmatprep.mubr.f32.mxu0 %v6117_v34  ;;  %4722 = vmatpush3.bf16.msra.mxu0 %v4719_v15  ;;  %v6275_v15 = vld [vmem:[#allocation2 + $0x32] sm:$0xff]  ;;  %v2660_v22 = vld [vmem:[#allocation8 + $0x2d8] sm:$0xff] }
 0x284   : > { %4357 = vmatmul.mubr.f32.gmra.mrb[6].mxu1 %v6019_v27  ;;  %4724 = vmatprep.subr.bf16.mxu0 %v4723_v19  ;;  %v1219_v27 = vld [vmem:[#allocation8 + $0x360] sm:$0xff]  ;;  %v6293_v24 = vld [vmem:[#allocation2 + $0x62] sm:$0xff] }
 0x285   : > { %4359 = vmatprep.mubr.f32.mxu1 %v6022_v31  ;;  %4870 = vmatpush3.bf16.msra.mxu1 %v4867_v1  ;;  %v4735_v31 = vpack.c.bf16 %v1220_v10, %v1219_v27  ;;  %v6280_v1 = vld [vmem:[#allocation2 + $0x3a] sm:$0xff]  ;;  %v1520_v10 = vld [vmem:[#allocation8 + $0x98] sm:$0xff] }
 0x286   : > { %4025 = vmatmul.mubr.f32.gmra.mrb[8].mxu0 %v6121_v41  ;;  %4872 = vmatprep.subr.bf16.mxu1 %v6226_v54  ;;  %v1519_v27 = vld [vmem:[#allocation8 + $0x90] sm:$0xff] }
 0x287   : > { %4027 = vmatprep.mubr.f32.mxu0 %v6125_v43  ;;  %4726 = vmatpush3.bf16.msra.mxu0 %v4723_v19  ;;  %v6283_v19 = vld [vmem:[#allocation2 + $0x4a] sm:$0xff]  ;;  %v6330_v2 = vld [vmem:[#allocation2 + $0xc2] sm:$0xff] }
 0x288   : > { %4360 = vmatmul.mubr.f32.gmra.mrb[8].mxu1 %v6025_v35  ;;  %4728 = vmatprep.subr.bf16.mxu0 %v4727_v63  ;;  %v4739_v35 = vpack.c.bf16 %v1222_v60, %v1221_v51  ;;  %v6300_v51 = vld [vmem:[#allocation2 + $0x6a] sm:$0xff] }
 0x289   : > { %4362 = vmatprep.mubr.f32.mxu1 %v6033_v11  ;;  %v1517_v11 = vld [vmem:[#allocation8 + $0x80] sm:$0xff] }
 0x28a   : > { %4028 = vmatmul.mubr.f32.gmra.mrb[10].mxu0 %v6129_v38  ;;  %v2661_v60 = vld [vmem:[#allocation8 + $0x2e0] sm:$0xff] }
 0x28b   : > { %4030 = vmatprep.mubr.f32.mxu0 %v6133_v50  ;;  %4730 = vmatpush3.bf16.msra.mxu0 %v4727_v63  ;;  %v2659_v63 = vld [vmem:[#allocation8 + $0x2d0] sm:$0xff] }
 0x28c   : > { %4363 = vmatmul.mubr.f32.gmra.mrb[10].mxu1 %v6036_v13  ;;  %4732 = vmatprep.subr.bf16.mxu0 %v4731_v59  ;;  %v6247_v13 = vpack.c.bf16 %v1518_v25, %v1517_v11  ;;  %v6303_v11 = vld [vmem:[#allocation2 + $0x7a] sm:$0xff]  ;;  %v4747_v25 = vpack.c.bf16 %v1520_v10, %v1519_v27  ;;  %v1529_v10 = vld [vmem:[#allocation8 + $0xe0] sm:$0xff] }
 0x28d   : > { %4365 = vmatprep.mubr.f32.mxu1 %v6039_v16  ;;  %v1514_v16 = vld [vmem:[#allocation2 + $0x199] sm:$0xff] }
 0x28e   : > { %4031 = vmatmul.mubr.f32.gmra.mrb[12].mxu0 %v6137_v61 }
 0x28f   : > { %4033 = vmatprep.mubr.f32.mxu0 %v6141_v62  ;;  %4734 = vmatpush3.bf16.msra.mxu0 %v4731_v59  ;;  %v6295_v59 = vld [vmem:[#allocation2 + $0x188] sm:$0xff] }
 0x290   : > { %4366 = vmatmul.mubr.f32.gmra.mrb[12].mxu1 %v6042_v18  ;;  %4736 = vmatprep.subr.bf16.mxu0 %v4735_v31  ;;  %v1515_v18 = vld [vmem:[#allocation2 + $0x1a1] sm:$0xff] }
 0x291   : > { %4368 = vmatprep.mubr.f32.mxu1 %v6050_v23  ;;  %v2338_v23 = vld [vmem:[#allocation2 + $0x2] sm:$0xff] }
 0x292   : > { %4034 = vmatmul.mubr.f32.gmra.mrb[14].mxu0 %v6145_v26 }
 0x293   : > { %4036 = vmatprep.mubr.f32.mxu0 %v6149_v30  ;;  %4738 = vmatpush3.bf16.msra.mxu0 %v4735_v31  ;;  %v4891_v31 = vpack.c.bf16 %v2660_v22, %v2659_v63  ;;  %v1527_v63 = vld [vmem:[#allocation8 + $0xd0] sm:$0xff]  ;;  %v1528_v22 = vld [vmem:[#allocation8 + $0xd8] sm:$0xff] }
 0x294   : > { %4369 = vmatmul.mubr.f32.gmra.mrb[14].mxu1 %v6053_v28  ;;  %4740 = vmatprep.subr.bf16.mxu0 %v4739_v35  ;;  %v2651_v28 = vld [vmem:[#allocation8 + $0x290] sm:$0xff]  ;;  %v4763_v27 = vpack.c.bf16 %v1528_v22, %v1527_v63  ;;  %v6425_v22 = vld [vmem:[#allocation2 + $0x31] sm:$0xff] }
 0x295   : > { %4371 = vmatprep.mubr.f32.mxu1 %v6056_v33  ;;  %v2652_v33 = vld [vmem:[#allocation8 + $0x298] sm:$0xff] }
 0x296   : > { %4037 = vmatmul.mubr.f32.gmra.mrb[16].mxu0 %v6153_v36 }
 0x297   : > { %4039 = vmatprep.mubr.f32.mxu0 %v6157_v0  ;;  %4742 = vmatpush3.bf16.msra.mxu0 %v4739_v35  ;;  %v2662_v35 = vld [vmem:[#allocation8 + $0x2e8] sm:$0xff] }
 0x298   : > { %4372 = vmatmul.mubr.f32.gmra.mrb[16].mxu1 %v6059_v42  ;;  %4744 = vmatprep.subr.bf16.mxu0 %v6247_v13  ;;  %v2339_v42 = vld [vmem:[#allocation2 + $0xa] sm:$0xff] }
 0x299   : > { %4374 = vmatprep.mubr.f32.mxu1 %v6067_v39  ;;  %v4875_v39 = vpack.c.bf16 %v2652_v33, %v2651_v28  ;;  %v2663_v28 = vld [vmem:[#allocation8 + $0x2f0] sm:$0xff]  ;;  %v2664_v33 = vld [vmem:[#allocation8 + $0x2f8] sm:$0xff] }
 0x29a   : > { %4040 = vmatmul.mubr.f32.gmra.mrb[18].mxu0 %v6161_v40 }
 0x29b   : > { %4042 = vmatprep.mubr.f32.mxu0 %v6165_v45 }
 0x29c   : > { %4375 = vmatmul.mubr.f32.gmra.mrb[18].mxu1 %v6070_v44  ;;  %v2653_v44 = vld [vmem:[#allocation8 + $0x2a0] sm:$0xff] }
 0x29d   : > { %4377 = vmatprep.mubr.f32.mxu1 %v6073_v46  ;;  %v2654_v46 = vld [vmem:[#allocation8 + $0x2a8] sm:$0xff] }
 0x29e   : > { %4043 = vmatmul.mubr.f32.gmra.mrb[20].mxu0 %v6169_v47  ;;  %v4879_v12 = vpack.c.bf16 %v2654_v46, %v2653_v44  ;;  %v1524_v44 = vld [vmem:[#allocation8 + $0xb8] sm:$0xff]  ;;  %v2923_v46 = vld [vmem:[#allocation8 + $0x400] sm:$0xff] }
 0x29f   : > { %4045 = vmatprep.mubr.f32.mxu0 %v6173_v21 }
 0x2a0   : > { %4378 = vmatmul.mubr.f32.gmra.mrb[20].mxu1 %v6076_v49  ;;  %v6266_v49 = vld [vmem:[#allocation2 + $0x1a] sm:$0xff] }
 0x2a1   : > { %4380 = vmatprep.mubr.f32.mxu1 %v1514_v16  ;;  %v1521_v16 = vld [vmem:[#allocation8 + $0xa0] sm:$0xff] }
 0x2a2   : > { %4046 = vmatmul.mubr.f32.gmra.mrb[22].mxu0 %v6177_v57 }
 0x2a3   : > { %4048 = vmatprep.mubr.f32.mxu0 %v6181_v48 }
 0x2a4   : > { %4381 = vmatmul.mubr.f32.gmra.mrb[22].mxu1 %v1515_v18  ;;  %v1522_v18 = vld [vmem:[#allocation8 + $0xa8] sm:$0xff] }
 0x2a5   : > { %4415 = vmatprep.mubr.f32.mxu1 %v2338_v23  ;;  %v4895_v23 = vpack.c.bf16 %v2662_v35, %v2661_v60  ;;  %v1531_v35 = vld [vmem:[#allocation8 + $0xf0] sm:$0xff] }
 0x2a6   : > { %4049 = vmatmul.mubr.f32.gmra.mrb[24].mxu0 %v6185_v9 }
 0x2a7   : > { %4051 = vmatprep.mubr.f32.mxu0 %v6189_v6 }
 0x2a8   : > { %4416 = vmatmul.mubr.f32.vlgmr.msra.gmra.mrb[24].mxu1 %v2339_v42  ;;  %v6312_v42 = vld [vmem:[#allocation2 + $0x92] sm:$0xff] }
 0x2a9   : > { %4874 = vmatpush3.bf16.msra.mxu1 %v6226_v54  ;;  %4418 = vmatprep.mubr.f32.mxu1 %v6266_v49  ;;  %v6290_v54 = vld [vmem:[#allocation2 + $0x52] sm:$0xff] }
 0x2aa   : > { %4052 = vmatmul.mubr.f32.gmra.mrb[26].mxu0 %v6193_v3  ;;  %4876 = vmatprep.subr.bf16.mxu1 %v4875_v39 }
 0x2ab   : > { %4054 = vmatprep.mubr.f32.mxu0 %v6197_v52 }
 0x2ac   : > { %4419 = vmatmul.mubr.f32.gmra.mrb[26].mxu1 %v6272_v14 }
 0x2ad   : > { %4421 = vmatprep.mubr.f32.mxu1 %v6275_v15  ;;  %4878 = vmatpush3.bf16.msra.mxu1 %v4875_v39  ;;  %v4751_v39 = vpack.c.bf16 %v1522_v18, %v1521_v16  ;;  %v6360_v18 = vld [vmem:[#allocation2 + $0x112] sm:$0xff] }
 0x2ae   : > { %4055 = vmatmul.mubr.f32.gmra.mrb[28].mxu0 %v6201_v8  ;;  %4880 = vmatprep.subr.bf16.mxu1 %v4879_v12 }
 0x2af   : > { %4057 = vmatprep.mubr.f32.mxu0 %v6754_v55 }
 0x2b0   : > { %4422 = vmatmul.mubr.f32.gmra.mrb[28].mxu1 %v6280_v1 }
 0x2b1   : > { %4424 = vmatprep.mubr.f32.mxu1 %v6283_v19  ;;  %4882 = vmatpush3.bf16.msra.mxu1 %v4879_v12  ;;  %v2924_v12 = vld [vmem:[#allocation8 + $0x408] sm:$0xff] }
 0x2b2   : > { %4058 = vmatmul.mubr.f32.gmra.mrb[30].mxu0 %v6209_v7  ;;  %4884 = vmatprep.subr.bf16.mxu1 %v4883_v17 }
 0x2b3   : > { %4060 = vmatprep.mubr.f32.mxu0 %v6287_v20 }
 0x2b4   : > { %4425 = vmatmul.mubr.f32.gmra.mrb[30].mxu1 %v6290_v54 }
 0x2b5   : > { %4427 = vmatprep.mubr.f32.mxu1 %v6293_v24  ;;  %4886 = vmatpush3.bf16.msra.mxu1 %v4883_v17  ;;  %v1525_v17 = vld [vmem:[#allocation8 + $0xc0] sm:$0xff] }
 0x2b6   : > { %4061 = vmatmul.mubr.f32.gmra.mrb[32].mxu0 %v6295_v59  ;;  %4888 = vmatprep.subr.bf16.mxu1 %v4887_v37 }
 0x2b7   : > { %4095 = vmatprep.mubr.f32.mxu0 %v6100_v29  ;;  %v6308_v29 = vld [vmem:[#allocation2 + $0x82] sm:$0xff] }
 0x2b8   : > { %4428 = vmatmul.mubr.f32.gmra.mrb[0].mxu1 %v6300_v51 }
 0x2b9   : > { %4430 = vmatprep.mubr.f32.mxu1 %v6303_v11  ;;  %4890 = vmatpush3.bf16.msra.mxu1 %v4887_v37 }
 0x2ba   : > { %4096 = vmatmul.mubr.f32.vlgmr.msra.gmra.mrb[2].mxu0 %v6105_v4  ;;  %4892 = vmatprep.subr.bf16.mxu1 %v4891_v31  ;;  %v1523_v4 = vld [vmem:[#allocation8 + $0xb0] sm:$0xff] }
 0x2bb   : > { %4098 = vmatprep.mubr.f32.mxu0 %v6109_v5  ;;  %4746 = vmatpush3.bf16.msra.mxu0 %v6247_v13  ;;  %v4899_v5 = vpack.c.bf16 %v2664_v33, %v2663_v28  ;;  %v6317_v13 = vld [vmem:[#allocation2 + $0x9a] sm:$0xff]  ;;  %v4755_v58 = vpack.c.bf16 %v1524_v44, %v1523_v4  ;;  %v6388_v28 = vld [vmem:[#allocation2 + $0x16a] sm:$0xff] }
 0x2bc   : > { %4431 = vmatmul.mubr.f32.gmra.mrb[2].mxu1 %v6308_v29  ;;  %4748 = vmatprep.subr.bf16.mxu0 %v4747_v25  ;;  %v2926_v33 = vld [vmem:[#allocation8 + $0x418] sm:$0xff]  ;;  %v2933_v4 = vld [vmem:[#allocation8 + $0x450] sm:$0xff] }
 0x2bd   : > { %4433 = vmatprep.mubr.f32.mxu1 %v6312_v42  ;;  %4894 = vmatpush3.bf16.msra.mxu1 %v4891_v31  ;;  %v1530_v31 = vld [vmem:[#allocation8 + $0xe8] sm:$0xff]  ;;  %v2934_v44 = vld [vmem:[#allocation8 + $0x458] sm:$0xff] }
 0x2be   : > { %4099 = vmatmul.mubr.f32.gmra.mrb[4].mxu0 %v6113_v32  ;;  %4896 = vmatprep.subr.bf16.mxu1 %v4895_v23  ;;  %v1526_v32 = vld [vmem:[#allocation8 + $0xc8] sm:$0xff]  ;;  %v4767_v60 = vpack.c.bf16 %v1530_v31, %v1529_v10  ;;  %v6435_v31 = vld [vmem:[#allocation2 + $0x49] sm:$0xff] }
 0x2bf   : > { %4101 = vmatprep.mubr.f32.mxu0 %v6117_v34  ;;  %4750 = vmatpush3.bf16.msra.mxu0 %v4747_v25  ;;  %v6324_v34 = vpack.c.bf16 %v2924_v12, %v2923_v46  ;;  %v4759_v37 = vpack.c.bf16 %v1526_v32, %v1525_v17  ;;  %v1532_v25 = vld [vmem:[#allocation8 + $0xf8] sm:$0xff]  ;;  %v2935_v46 = vld [vmem:[#allocation8 + $0x460] sm:$0xff]  ;;  %v2936_v12 = vld [vmem:[#allocation8 + $0x468] sm:$0xff] }
 0x2c0   : > { %4434 = vmatmul.mubr.f32.gmra.mrb[4].mxu1 %v6317_v13  ;;  %4752 = vmatprep.subr.bf16.mxu0 %v4751_v39  ;;  %v4771_v16 = vpack.c.bf16 %v1532_v25, %v1531_v35  ;;  %v2937_v17 = vld [vmem:[#allocation8 + $0x470] sm:$0xff]  ;;  %v2938_v32 = vld [vmem:[#allocation8 + $0x478] sm:$0xff]  ;;  %v6442_v35 = vld [vmem:[#allocation2 + $0x51] sm:$0xff] }
 0x2c1   : > { %4436 = vmatprep.mubr.f32.mxu1 %v6320_v53  ;;  %4898 = vmatpush3.bf16.msra.mxu1 %v4895_v23  ;;  %v6377_v23 = vld [vmem:[#allocation2 + $0x142] sm:$0xff]  ;;  %v4931_v63 = vpack.c.bf16 %v2938_v32, %v2937_v17  ;;  %v6432_v10 = vld [vmem:[#allocation2 + $0x39] sm:$0xff] }
 0x2c2   : > { %4102 = vmatmul.mubr.f32.gmra.mrb[6].mxu0 %v6121_v41  ;;  %4900 = vmatprep.subr.bf16.mxu1 %v4899_v5  ;;  %v6336_v41 = vld [vmem:[#allocation2 + $0xca] sm:$0xff]  ;;  %v6445_v25 = vld [vmem:[#allocation2 + $0x61] sm:$0xff]  ;;  %v5338_v17 = vld [vmem:[#allocation2 + $0x139] sm:$0xff] }
 0x2c3   : > { %4104 = vmatprep.mubr.f32.mxu0 %v6125_v43  ;;  %4754 = vmatpush3.bf16.msra.mxu0 %v4751_v39  ;;  %v6339_v43 = vld [vmem:[#allocation2 + $0xda] sm:$0xff] }
 0x2c4   : > { %4437 = vmatmul.mubr.f32.gmra.mrb[6].mxu1 %v6327_v56  ;;  %4756 = vmatprep.subr.bf16.mxu0 %v4755_v58  ;;  %v2928_v39 = vld [vmem:[#allocation8 + $0x428] sm:$0xff]  ;;  %v5339_v32 = vld [vmem:[#allocation2 + $0x141] sm:$0xff] }
 0x2c5   : > { %4439 = vmatprep.mubr.f32.mxu1 %v6330_v2  ;;  %4902 = vmatpush3.bf16.msra.mxu1 %v4899_v5  ;;  %v1481_v5 = vld [vmem:[#allocation2 + $0x9] sm:$0xff] }
 0x2c6   : > { %4105 = vmatmul.mubr.f32.gmra.mrb[8].mxu0 %v6129_v38  ;;  %4904 = vmatprep.subr.bf16.mxu1 %v6324_v34  ;;  %v6344_v38 = vld [vmem:[#allocation2 + $0xe2] sm:$0xff] }
 0x2c7   : > { %4107 = vmatprep.mubr.f32.mxu0 %v6133_v50  ;;  %4758 = vmatpush3.bf16.msra.mxu0 %v4755_v58  ;;  %v6347_v50 = vld [vmem:[#allocation2 + $0xf2] sm:$0xff]  ;;  %v4927_v58 = vpack.c.bf16 %v2936_v12, %v2935_v46  ;;  %v5336_v12 = vld [vmem:[#allocation2 + $0x121] sm:$0xff] }
 0x2c8   : > { %4440 = vmatmul.mubr.f32.gmra.mrb[8].mxu1 %v6336_v41  ;;  %4760 = vmatprep.subr.bf16.mxu0 %v4759_v37  ;;  %v5335_v46 = vld [vmem:[#allocation2 + $0x111] sm:$0xff] }
 0x2c9   : > { %4442 = vmatprep.mubr.f32.mxu1 %v6339_v43 }
 0x2ca   : > { %4108 = vmatmul.mubr.f32.gmra.mrb[10].mxu0 %v6137_v61  ;;  %v6352_v61 = vld [vmem:[#allocation2 + $0xfa] sm:$0xff] }
 0x2cb   : > { %4110 = vmatprep.mubr.f32.mxu0 %v6141_v62  ;;  %4762 = vmatpush3.bf16.msra.mxu0 %v4759_v37  ;;  %v6355_v62 = vld [vmem:[#allocation2 + $0x10a] sm:$0xff]  ;;  %v6421_v37 = vld [vmem:[#allocation2 + $0x21] sm:$0xff] }
 0x2cc   : > { %4443 = vmatmul.mubr.f32.gmra.mrb[10].mxu1 %v6344_v38  ;;  %4764 = vmatprep.subr.bf16.mxu0 %v4763_v27 }
 0x2cd   : > { %4445 = vmatprep.mubr.f32.mxu1 %v6347_v50 }
 0x2ce   : > { %4111 = vmatmul.mubr.f32.gmra.mrb[12].mxu0 %v6145_v26  ;;  %v6363_v26 = vld [vmem:[#allocation2 + $0x122] sm:$0xff] }
 0x2cf   : > { %4113 = vmatprep.mubr.f32.mxu0 %v6149_v30  ;;  %4766 = vmatpush3.bf16.msra.mxu0 %v4763_v27  ;;  %v6368_v30 = vld [vmem:[#allocation2 + $0x12a] sm:$0xff]  ;;  %v6757_v27 = vld [vmem:[#allocation15_spill] sm:$0xff] }
 0x2d0   : > { %4446 = vmatmul.mubr.f32.gmra.mrb[12].mxu1 %v6352_v61  ;;  %4768 = vmatprep.subr.bf16.mxu0 %v4767_v60 }
 0x2d1   : > { %4448 = vmatprep.mubr.f32.mxu1 %v6355_v62 }
 0x2d2   : > { %4114 = vmatmul.mubr.f32.gmra.mrb[14].mxu0 %v6153_v36  ;;  %v6371_v36 = vld [vmem:[#allocation2 + $0x13a] sm:$0xff] }
 0x2d3   : > { %4116 = vmatprep.mubr.f32.mxu0 %v6157_v0  ;;  %4770 = vmatpush3.bf16.msra.mxu0 %v4767_v60  ;;  %v6755_v0 = vld [vmem:[#allocation13_spill] sm:$0xff]  ;;  %v6758_v60 = vld [vmem:[#allocation16_spill] sm:$0xff] }
 0x2d4   : > { %4449 = vmatmul.mubr.f32.gmra.mrb[14].mxu1 %v6360_v18  ;;  %4772 = vmatprep.subr.bf16.mxu0 %v4771_v16 }
 0x2d5   : > { %4451 = vmatprep.mubr.f32.mxu1 %v6363_v26 }
 0x2d6   : > { %4117 = vmatmul.mubr.f32.gmra.mrb[16].mxu0 %v6161_v40  ;;  %v6380_v40 = vld [vmem:[#allocation2 + $0x152] sm:$0xff] }
 0x2d7   : > { %4119 = vmatprep.mubr.f32.mxu0 %v6165_v45  ;;  %4774 = vmatpush3.bf16.msra.mxu0 %v4771_v16  ;;  %v6385_v45 = vld [vmem:[#allocation2 + $0x15a] sm:$0xff]  ;;  %v6759_v16 = vld [vmem:[#allocation17_spill] sm:$0xff] }
 0x2d8   : > { %4452 = vmatmul.mubr.f32.gmra.mrb[16].mxu1 %v6368_v30  ;;  %4776 = vmatprep.subr.bf16.mxu0 %v6755_v0 }
 0x2d9   : > { %4454 = vmatprep.mubr.f32.mxu1 %v6371_v36 }
 0x2da   : > { %4120 = vmatmul.mubr.f32.gmra.mrb[18].mxu0 %v6169_v47  ;;  %v6393_v47 = vld [vmem:[#allocation2 + $0x172] sm:$0xff] }
 0x2db   : > { %4122 = vmatprep.mubr.f32.mxu0 %v6173_v21  ;;  %v2925_v21 = vld [vmem:[#allocation8 + $0x410] sm:$0xff] }
 0x2dc   : > { %4455 = vmatmul.mubr.f32.gmra.mrb[18].mxu1 %v6377_v23 }
 0x2dd   : > { %4457 = vmatprep.mubr.f32.mxu1 %v6380_v40 }
 0x2de   : > { %4123 = vmatmul.mubr.f32.gmra.mrb[20].mxu0 %v6177_v57  ;;  %v2927_v57 = vld [vmem:[#allocation8 + $0x420] sm:$0xff] }
 0x2df   : > { %4125 = vmatprep.mubr.f32.mxu0 %v6181_v48  ;;  %v4907_v48 = vpack.c.bf16 %v2926_v33, %v2925_v21  ;;  %v5322_v21 = vld [vmem:[#allocation2 + $0x79] sm:$0xff] }
 0x2e0   : > { %4458 = vmatmul.mubr.f32.gmra.mrb[20].mxu1 %v6385_v45  ;;  %v6760_v33 = vld [vmem:[#allocation18_spill] sm:$0xff] }
 0x2e1   : > { %4460 = vmatprep.mubr.f32.mxu1 %v6388_v28 }
 0x2e2   : > { %4126 = vmatmul.mubr.f32.gmra.mrb[22].mxu0 %v6185_v9  ;;  %v2929_v9 = vld [vmem:[#allocation8 + $0x430] sm:$0xff] }
 0x2e3   : > { %4128 = vmatprep.mubr.f32.mxu0 %v6189_v6  ;;  %v4911_v6 = vpack.c.bf16 %v2928_v39, %v2927_v57  ;;  %v5324_v57 = vld [vmem:[#allocation2 + $0x91] sm:$0xff]  ;;  %v6761_v39 = vld [vmem:[#allocation19_spill] sm:$0xff] }
 0x2e4   : > { %4461 = vmatmul.mubr.f32.gmra.mrb[22].mxu1 %v6393_v47 }
 0x2e5   : > { %4495 = vmatprep.mubr.f32.mxu1 %v6266_v49  ;;  %v2930_v49 = vld [vmem:[#allocation8 + $0x438] sm:$0xff] }
 0x2e6   : > { %4129 = vmatmul.mubr.f32.gmra.mrb[24].mxu0 %v6193_v3  ;;  %v4915_v3 = vpack.c.bf16 %v2930_v49, %v2929_v9  ;;  %v5326_v9 = vld [vmem:[#allocation2 + $0xa9] sm:$0xff] }
 0x2e7   : > { %4131 = vmatprep.mubr.f32.mxu0 %v6197_v52  ;;  %v2931_v52 = vld [vmem:[#allocation8 + $0x440] sm:$0xff]  ;;  %v6762_v49 = vld [vmem:[#allocation20_spill] sm:$0xff] }
 0x2e8   : > { %4496 = vmatmul.mubr.f32.vlgmr.msra.gmra.mrb[24].mxu1 %v6272_v14  ;;  %v2932_v14 = vld [vmem:[#allocation8 + $0x448] sm:$0xff] }
 0x2e9   : > { %4906 = vmatpush3.bf16.msra.mxu1 %v6324_v34  ;;  %4498 = vmatprep.mubr.f32.mxu1 %v6275_v15  ;;  %v6756_v34 = vld [vmem:[#allocation14_spill] sm:$0xff] }
 0x2ea   : > { %4132 = vmatmul.mubr.f32.gmra.mrb[26].mxu0 %v6201_v8  ;;  %4908 = vmatprep.subr.bf16.mxu1 %v4907_v48  ;;  %v4919_v8 = vpack.c.bf16 %v2932_v14, %v2931_v52  ;;  %v5328_v52 = vld [vmem:[#allocation2 + $0xc1] sm:$0xff]  ;;  %v5329_v14 = vld [vmem:[#allocation2 + $0xc9] sm:$0xff] }
 0x2eb   : > { %4134 = vmatprep.mubr.f32.mxu0 %v6754_v55  ;;  %v5315_v55 = vld [vmem:[#allocation2] sm:$0xff] }
 0x2ec   : > { %4499 = vmatmul.mubr.f32.gmra.mrb[26].mxu1 %v6280_v1 }
 0x2ed   : > { %4501 = vmatprep.mubr.f32.mxu1 %v6283_v19  ;;  %4910 = vmatpush3.bf16.msra.mxu1 %v4907_v48  ;;  %v5323_v48 = vld [vmem:[#allocation2 + $0x81] sm:$0xff] }
 0x2ee   : > { %4135 = vmatmul.mubr.f32.gmra.mrb[28].mxu0 %v6209_v7  ;;  %4912 = vmatprep.subr.bf16.mxu1 %v4911_v6  ;;  %v1480_v7 = vld [vmem:[#allocation2 + $0x1] sm:$0xff] }
 0x2ef   : > { %4137 = vmatprep.mubr.f32.mxu0 %v6287_v20  ;;  %v4923_v20 = vpack.c.bf16 %v2934_v44, %v2933_v4  ;;  %v5332_v4 = vld [vmem:[#allocation2 + $0xf1] sm:$0xff]  ;;  %v2370_v44 = vld [vmem:[#allocation2 + $0x182] sm:$0xff] }
 0x2f0   : > { %4502 = vmatmul.mubr.f32.gmra.mrb[28].mxu1 %v6290_v54 }
 0x2f1   : > { %4504 = vmatprep.mubr.f32.mxu1 %v6293_v24  ;;  %4914 = vmatpush3.bf16.msra.mxu1 %v4911_v6  ;;  %v5325_v6 = vld [vmem:[#allocation2 + $0x99] sm:$0xff] }
 0x2f2   : > { %4138 = vmatmul.mubr.f32.gmra.mrb[30].mxu0 %v6295_v59  ;;  %4916 = vmatprep.subr.bf16.mxu1 %v4915_v3  ;;  %v6415_v59 = vld [vmem:[#allocation2 + $0x19] sm:$0xff] }
 0x2f3   : > { %4140 = vmatprep.mubr.f32.mxu0 %v5315_v55 }
 0x2f4   : > { %4505 = vmatmul.mubr.f32.gmra.mrb[30].mxu1 %v6300_v51 }
 0x2f5   : > { %4507 = vmatprep.mubr.f32.mxu1 %v6303_v11  ;;  %4918 = vmatpush3.bf16.msra.mxu1 %v4915_v3  ;;  %v5327_v3 = vld [vmem:[#allocation2 + $0xb1] sm:$0xff] }
 0x2f6   : > { %4141 = vmatmul.mubr.f32.gmra.mrb[32].mxu0 %v5315_v55  ;;  %4920 = vmatprep.subr.bf16.mxu1 %v4919_v8  ;;  %v5331_v55 = vld [vmem:[#allocation2 + $0xe1] sm:$0xff] }
 0x2f7   : > { %4175 = vmatprep.mubr.f32.mxu0 %v1480_v7  ;;  %v5333_v7 = vld [vmem:[#allocation2 + $0xf9] sm:$0xff] }
 0x2f8   : > { %4508 = vmatmul.mubr.f32.gmra.mrb[0].mxu1 %v6308_v29 }
 0x2f9   : > { %4510 = vmatprep.mubr.f32.mxu1 %v6312_v42  ;;  %4922 = vmatpush3.bf16.msra.mxu1 %v4919_v8  ;;  %v5330_v8 = vld [vmem:[#allocation2 + $0xd9] sm:$0xff] }
 0x2fa   : > { %4176 = vmatmul.mubr.f32.vlgmr.msra.gmra.mrb[2].mxu0 %v1481_v5  ;;  %4924 = vmatprep.subr.bf16.mxu1 %v4923_v20  ;;  %v2371_v5 = vld [vmem:[#allocation2 + $0x18a] sm:$0xff] }
 0x2fb   : > { %4178 = vmatprep.mubr.f32.mxu0 %v6415_v59  ;;  %4778 = vmatpush3.bf16.msra.mxu0 %v6755_v0  ;;  %v6452_v0 = vld [vmem:[#allocation2 + $0x69] sm:$0xff] }
 0x2fc   : > { %4511 = vmatmul.mubr.f32.gmra.mrb[2].mxu1 %v6317_v13  ;;  %4780 = vmatprep.subr.bf16.mxu0 %v6756_v34 }
 0x2fd   : > { %4513 = vmatprep.mubr.f32.mxu1 %v6320_v53  ;;  %4926 = vmatpush3.bf16.msra.mxu1 %v4923_v20  ;;  %v5334_v20 = vld [vmem:[#allocation2 + $0x109] sm:$0xff] }
 0x2fe   : > { %4179 = vmatmul.mubr.f32.gmra.mrb[4].mxu0 %v6421_v37  ;;  %4928 = vmatprep.subr.bf16.mxu1 %v4927_v58 }
 0x2ff   : > { %4181 = vmatprep.mubr.f32.mxu0 %v6425_v22  ;;  %4782 = vmatpush3.bf16.msra.mxu0 %v6756_v34  ;;  %v5340_v34 = vld [vmem:[#allocation2 + $0x151] sm:$0xff] }
 0x300   : > { %4514 = vmatmul.mubr.f32.gmra.mrb[4].mxu1 %v6327_v56  ;;  %4784 = vmatprep.subr.bf16.mxu0 %v6757_v27 }
 0x301   : > { %4516 = vmatprep.mubr.f32.mxu1 %v6330_v2  ;;  %4930 = vmatpush3.bf16.msra.mxu1 %v4927_v58  ;;  %v5337_v58 = vld [vmem:[#allocation2 + $0x129] sm:$0xff] }
 0x302   : > { %4182 = vmatmul.mubr.f32.gmra.mrb[6].mxu0 %v6432_v10  ;;  %4932 = vmatprep.subr.bf16.mxu1 %v4931_v63 }
 0x303   : > { %4184 = vmatprep.mubr.f32.mxu0 %v6435_v31  ;;  %4786 = vmatpush3.bf16.msra.mxu0 %v6757_v27 }
 0x304   : > { %4517 = vmatmul.mubr.f32.gmra.mrb[6].mxu1 %v6336_v41  ;;  %4788 = vmatprep.subr.bf16.mxu0 %v6758_v60 }
 0x305   : > { %4519 = vmatprep.mubr.f32.mxu1 %v6339_v43  ;;  %4934 = vmatpush3.bf16.msra.mxu1 %v4931_v63 }
 0x306   : > { %4185 = vmatmul.mubr.f32.gmra.mrb[8].mxu0 %v6442_v35 }
 0x307   : > { %4187 = vmatprep.mubr.f32.mxu0 %v6445_v25  ;;  %4790 = vmatpush3.bf16.msra.mxu0 %v6758_v60 }
 0x308   : > { %4520 = vmatmul.mubr.f32.gmra.mrb[8].mxu1 %v6344_v38  ;;  %4792 = vmatprep.subr.bf16.mxu0 %v6759_v16 }
 0x309   : > { %4522 = vmatprep.mubr.f32.mxu1 %v6347_v50 }
 0x30a   : > { %4188 = vmatmul.mubr.f32.gmra.mrb[10].mxu0 %v6452_v0 }
 0x30b   : > { %4190 = vmatprep.mubr.f32.mxu0 %v5322_v21  ;;  %4794 = vmatpush3.bf16.msra.mxu0 %v6759_v16 }
 0x30c   : > { %4523 = vmatmul.mubr.f32.gmra.mrb[10].mxu1 %v6352_v61  ;;  %4796 = vmatprep.subr.bf16.mxu0 %v6760_v33 }
 0x30d   : > { %4525 = vmatprep.mubr.f32.mxu1 %v6355_v62 }
 0x30e   : > { %4191 = vmatmul.mubr.f32.gmra.mrb[12].mxu0 %v5323_v48 }
 0x30f   : > { %4193 = vmatprep.mubr.f32.mxu0 %v5324_v57  ;;  %4798 = vmatpush3.bf16.msra.mxu0 %v6760_v33 }
 0x310   : > { %4526 = vmatmul.mubr.f32.gmra.mrb[12].mxu1 %v6360_v18  ;;  %4800 = vmatprep.subr.bf16.mxu0 %v6761_v39 }
 0x311   : > { %4528 = vmatprep.mubr.f32.mxu1 %v6363_v26 }
 0x312   : > { %4194 = vmatmul.mubr.f32.gmra.mrb[14].mxu0 %v5325_v6 }
 0x313   : > { %4196 = vmatprep.mubr.f32.mxu0 %v5326_v9  ;;  %4802 = vmatpush3.bf16.msra.mxu0 %v6761_v39 }
 0x314   : > { %4529 = vmatmul.mubr.f32.gmra.mrb[14].mxu1 %v6368_v30  ;;  %4804 = vmatprep.subr.bf16.mxu0 %v6762_v49 }
 0x315   : > { %4531 = vmatprep.mubr.f32.mxu1 %v6371_v36 }
 0x316   : > { %4197 = vmatmul.mubr.f32.gmra.mrb[16].mxu0 %v5327_v3 }
 0x317   : > { %4199 = vmatprep.mubr.f32.mxu0 %v5328_v52  ;;  %4806 = vmatpush3.bf16.msra.mxu0 %v6762_v49 }
 0x318   : > { %4532 = vmatmul.mubr.f32.gmra.mrb[16].mxu1 %v6377_v23 }
 0x319   : > { %4534 = vmatprep.mubr.f32.mxu1 %v6380_v40 }
 0x31a   : > { %4200 = vmatmul.mubr.f32.gmra.mrb[18].mxu0 %v5329_v14 }
 0x31b   : > { %4202 = vmatprep.mubr.f32.mxu0 %v5330_v8 }
 0x31c   : > { %4535 = vmatmul.mubr.f32.gmra.mrb[18].mxu1 %v6385_v45 }
 0x31d   : > { %4537 = vmatprep.mubr.f32.mxu1 %v6388_v28 }
 0x31e   : > { %4203 = vmatmul.mubr.f32.gmra.mrb[20].mxu0 %v5331_v55 }
 0x31f   : > { %4205 = vmatprep.mubr.f32.mxu0 %v5332_v4 }
 0x320   : > { %4538 = vmatmul.mubr.f32.gmra.mrb[20].mxu1 %v6393_v47 }
 0x321   : > { %4540 = vmatprep.mubr.f32.mxu1 %v2370_v44 }
 0x322   : > { %4206 = vmatmul.mubr.f32.gmra.mrb[22].mxu0 %v5333_v7 }
 0x323   : > { %4208 = vmatprep.mubr.f32.mxu0 %v5334_v20 }
 0x324   : > { %4541 = vmatmul.mubr.f32.gmra.mrb[22].mxu1 %v2371_v5 }
 0x325   : > { %4575 = vmatprep.mubr.f32.mxu1 %v6275_v15  ;;  %v5341_v15 = vld [vmem:[#allocation2 + $0x159] sm:$0xff] }
 0x326   : > { %4209 = vmatmul.mubr.f32.gmra.mrb[24].mxu0 %v5335_v46 }
 0x327   : > { %4211 = vmatprep.mubr.f32.mxu0 %v5336_v12 }
 0x328   : > { %4576 = vmatmul.mubr.f32.vlgmr.msra.gmra.mrb[24].mxu1 %v6280_v1  ;;  %v5342_v1 = vld [vmem:[#allocation2 + $0x169] sm:$0xff] }
 0x329   : > { %4578 = vmatprep.mubr.f32.mxu1 %v6283_v19  ;;  %v5343_v19 = vld [vmem:[#allocation2 + $0x171] sm:$0xff] }
 0x32a   : > { %4212 = vmatmul.mubr.f32.gmra.mrb[26].mxu0 %v5337_v58 }
 0x32b   : > { %4214 = vmatprep.mubr.f32.mxu0 %v5338_v17 }
 0x32c   : > { %4579 = vmatmul.mubr.f32.gmra.mrb[26].mxu1 %v6290_v54  ;;  %v2372_v54 = vld [vmem:[#allocation2 + $0x19a] sm:$0xff] }
 0x32d   : > { %4581 = vmatprep.mubr.f32.mxu1 %v6293_v24  ;;  %v2373_v24 = vld [vmem:[#allocation2 + $0x1a2] sm:$0xff] }
 0x32e   : > { %4215 = vmatmul.mubr.f32.gmra.mrb[28].mxu0 %v5339_v32 }
 0x32f   : > { %4217 = vmatprep.mubr.f32.mxu0 %v5340_v34 }
 0x330   : > { %4582 = vmatmul.mubr.f32.gmra.mrb[28].mxu1 %v6300_v51 }
 0x331   : > { %4584 = vmatprep.mubr.f32.mxu1 %v6303_v11 }
 0x332   : > { %4218 = vmatmul.mubr.f32.gmra.mrb[30].mxu0 %v5341_v15 }
 0x333   : > { %4220 = vmatprep.mubr.f32.mxu0 %v5342_v1 }
 0x334   : > { %4585 = vmatmul.mubr.f32.gmra.mrb[30].mxu1 %v6308_v29 }
 0x335   : > { %4587 = vmatprep.mubr.f32.mxu1 %v6312_v42 }
 0x336   : > { %4221 = vmatmul.mubr.f32.gmra.mrb[32].mxu0 %v5343_v19 }
 0x337   : > { %4255 = vmatprep.mubr.f32.mxu0 %v6415_v59 }
 0x338   : > { %4588 = vmatmul.mubr.f32.gmra.mrb[0].mxu1 %v6317_v13 }
 0x339   : > { %4590 = vmatprep.mubr.f32.mxu1 %v6320_v53 }
 0x33a   : > { %4256 = vmatmul.mubr.f32.vlgmr.msra.gmra.mrb[2].mxu0 %v6421_v37 }
 0x33b   : > { %4258 = vmatprep.mubr.f32.mxu0 %v6425_v22  ;;  %v6538_v22 = vld [vmem:[%s6712_s4] ss:$0 sm:$0xff] }
 0x33c   : > { %4591 = vmatmul.mubr.f32.gmra.mrb[2].mxu1 %v6327_v56 }
 0x33d   : > { %4593 = vmatprep.mubr.f32.mxu1 %v6330_v2 }
 0x33e   : > { %4259 = vmatmul.mubr.f32.gmra.mrb[4].mxu0 %v6432_v10 }
 0x33f   : > { %4261 = vmatprep.mubr.f32.mxu0 %v6435_v31 }
 0x340   : > { %4594 = vmatmul.mubr.f32.gmra.mrb[4].mxu1 %v6336_v41 }
 0x341   : > { %4596 = vmatprep.mubr.f32.mxu1 %v6339_v43 }
 0x342   : > { %4262 = vmatmul.mubr.f32.gmra.mrb[6].mxu0 %v6442_v35 }
 0x343   : > { %4264 = vmatprep.mubr.f32.mxu0 %v6445_v25 }
 0x344   : > { %4597 = vmatmul.mubr.f32.gmra.mrb[6].mxu1 %v6344_v38 }
 0x345   : > { %4599 = vmatprep.mubr.f32.mxu1 %v6347_v50 }
 0x346   : > { %4265 = vmatmul.mubr.f32.gmra.mrb[8].mxu0 %v6452_v0 }
 0x348   : > { %4600 = vmatmul.mubr.f32.gmra.mrb[8].mxu1 %v6352_v61 }
 0x349   : > { %4602 = vmatprep.mubr.f32.mxu1 %v6355_v62 }
 0x34c   : > { %4603 = vmatmul.mubr.f32.gmra.mrb[10].mxu1 %v6360_v18 }
 0x34d   : > { %4605 = vmatprep.mubr.f32.mxu1 %v6363_v26 }
 0x350   : > { %4606 = vmatmul.mubr.f32.gmra.mrb[12].mxu1 %v6368_v30 }
 0x351   : > { %4608 = vmatprep.mubr.f32.mxu1 %v6371_v36 }
 0x354   : > { %4609 = vmatmul.mubr.f32.gmra.mrb[14].mxu1 %v6377_v23 }
 0x355   : > { %4611 = vmatprep.mubr.f32.mxu1 %v6380_v40 }
 0x358   : > { %4612 = vmatmul.mubr.f32.gmra.mrb[16].mxu1 %v6385_v45 }
 0x359   : > { %4614 = vmatprep.mubr.f32.mxu1 %v6388_v28 }
 0x35c   : > { %4615 = vmatmul.mubr.f32.gmra.mrb[18].mxu1 %v6393_v47 }
 0x35d   : > { %4617 = vmatprep.mubr.f32.mxu1 %v2370_v44 }
 0x360   : > { %4618 = vmatmul.mubr.f32.gmra.mrb[20].mxu1 %v2371_v5 }
 0x361   : > { %4620 = vmatprep.mubr.f32.mxu1 %v2372_v54 }
 0x364   : > { %4621 = vmatmul.mubr.f32.gmra.mrb[22].mxu1 %v2373_v24 }
 0x3dd   : > { %v4189_v51 = vpop.f32.mrb[10].mxu0 }
 0x3de   : > { %v1639_v11 = vpop.f32.mrb[11].mxu0  ;;  %v4967_v16 = vadd.f32 %v4189_v51, %v6538_v22 }
 0x3df   : > { %v4969_v33 = vadd.f32 %v6538_v22, %v1639_v11 }
 0x3e1   : > { %v4192_v29 = vpop.f32.mrb[12].mxu0 }
 0x3e2   : > { %v1649_v42 = vpop.f32.mrb[13].mxu0  ;;  %v4971_v3 = vadd.f32 %v4192_v29, %v6538_v22 }
 0x3e3   : > { %v4973_v8 = vadd.f32 %v6538_v22, %v1649_v42 }
 0x3e5   : > { %v4195_v13 = vpop.f32.mrb[14].mxu0 }
 0x3e6   : > { %v1659_v53 = vpop.f32.mrb[15].mxu0  ;;  %v4975_v58 = vadd.f32 %v4195_v13, %v6538_v22 }
 0x3e7   : > { %v4977_v34 = vadd.f32 %v6538_v22, %v1659_v53 }
 0x3e9   : > { %v4198_v56 = vpop.f32.mrb[16].mxu0 }
 0x3ea   : > { %v6509_v2 = vpop.f32.mrb[17].mxu0  ;;  %v4979_v42 = vadd.f32 %v4198_v56, %v6538_v22 }
 0x3eb   : > { %v4981_v53 = vadd.f32 %v6538_v22, %v6509_v2 }
 0x3ed   : > { %v6511_v41 = vpop.f32.mrb[18].mxu0 }
 0x3ee   : > { %v6513_v43 = vpop.f32.mrb[19].mxu0  ;;  %v4983_v56 = vadd.f32 %v6511_v41, %v6538_v22 }
 0x3ef   : > { %v4985_v2 = vadd.f32 %v6538_v22, %v6513_v43 }
 0x3f1   : > { %v6515_v38 = vpop.f32.mrb[20].mxu0 }
 0x3f2   : > { %v6517_v50 = vpop.f32.mrb[21].mxu0 }
 0x3f3   : > { %v4989_v41 = vadd.f32 %v6538_v22, %v6517_v50 }
 0x3f5   : > { %v6519_v61 = vpop.f32.mrb[22].mxu0 }
 0x3f6   : > { %v6521_v62 = vpop.f32.mrb[23].mxu0 }
 0x3f9   : > { %v6523_v18 = vpop.f32.mrb[24].mxu0 }
 0x3fa   : > { %v6525_v26 = vpop.f32.mrb[25].mxu0  ;;  %v4995_v50 = vadd.f32 %v6523_v18, %v6538_v22 }
 0x3fb   : > { %v4577_v30 = vpop.f32.mrb[24].mxu1 }
 0x3fc   : > { %v3005_v36 = vpop.f32.mrb[25].mxu1 }
 0x3fd   : > { %v6527_v23 = vpop.f32.mrb[26].mxu0 }
 0x3fe   : > { %v6529_v40 = vpop.f32.mrb[27].mxu0 }
 0x3ff   : > { %v4580_v45 = vpop.f32.mrb[26].mxu1 }
 0x400   : > { %v3015_v28 = vpop.f32.mrb[27].mxu1 }
 0x401   : > { %v6531_v47 = vpop.f32.mrb[28].mxu0 }
 0x402   : > { %v6533_v59 = vpop.f32.mrb[29].mxu0 }
 0x403   : > { %v4583_v37 = vpop.f32.mrb[28].mxu1 }
 0x404   : > { %v3025_v63 = vpop.f32.mrb[29].mxu1 }
 0x405   : > { %v4219_v27 = vpop.f32.mrb[30].mxu0 }
 0x406   : > { %v6541_v10 = vadd.f32 %v4219_v27, %v6538_v22  ;;  %v6543_v31 = vpop.f32.mrb[31].mxu0 }
 0x407   : > { %v4586_v60 = vpop.f32.mrb[30].mxu1 }
 0x408   : > { %v3035_v35 = vpop.f32.mrb[31].mxu1 }
 0x409   : > { %v4222_v25 = vpop.f32.mrb[32].mxu0 }
 0x40a   : > { %v6547_v0 = vadd.f32 %v4222_v25, %v6538_v22  ;;  %v1749_v21 = vpop.f32.mrb[33].mxu0 }
 0x40b   : > { %v6551_v48 = vadd.f32 %v6538_v22, %v1749_v21  ;;  %v4589_v57 = vpop.f32.mrb[0].mxu1 }
 0x40c   : > { %v6553_v39 = vadd.f32 %v4967_v16, %v4589_v57  ;;  %v3045_v6 = vpop.f32.mrb[1].mxu1 }
 0x40d   : > { %v4257_v9 = vpop.f32.mrb[2].mxu0  ;;  %v6555_v49 = vadd.f32 %v4969_v33, %v3045_v6 }
 0x40e   : > { %v4951_v52 = vadd.f32 %v4257_v9, %v6538_v22  ;;  %v1873_v14 = vpop.f32.mrb[3].mxu0 }
 0x40f   : > { %v4953_v55 = vadd.f32 %v6538_v22, %v1873_v14  ;;  %v4592_v4 = vpop.f32.mrb[2].mxu1 }
 0x410   : > { %v4952_v44 = vadd.f32 %v4951_v52, %v4577_v30  ;;  %v6561_v7 = vadd.f32 %v4971_v3, %v4592_v4  ;;  %v3055_v20 = vpop.f32.mrb[3].mxu1 }
 0x411   : > { %v4260_v5 = vpop.f32.mrb[4].mxu0  ;;  %v4954_v46 = vadd.f32 %v4953_v55, %v3005_v36  ;;  %v6563_v12 = vadd.f32 %v4973_v8, %v3055_v20  ;;  %v4987_v55 = vadd.f32 %v6515_v38, %v6538_v22 }
 0x412   : > { %v4955_v17 = vadd.f32 %v4260_v5, %v6538_v22  ;;  %v1883_v32 = vpop.f32.mrb[5].mxu0  ;;  %v4991_v5 = vadd.f32 %v6519_v61, %v6538_v22 }
 0x413   : > { %v4957_v15 = vadd.f32 %v6538_v22, %v1883_v32  ;;  %3196 = vxpose.xlu0.b32.start [1/16] %v4954_v46, 128  ;;  %v4595_v1 = vpop.f32.mrb[4].mxu1 }
 0x414   : > { %v4956_v19 = vadd.f32 %v4955_v17, %v4580_v45  ;;  %v6569_v54 = vadd.f32 %v4975_v58, %v4595_v1  ;;  %v3065_v24 = vpop.f32.mrb[5].mxu1  ;;  %v4997_v17 = vadd.f32 %v6538_v22, %v6525_v26  ;;  %v5001_v1 = vadd.f32 %v6538_v22, %v6529_v40 }
 0x415   : > { %v4958_v51 = vadd.f32 %v4957_v15, %v3015_v28  ;;  %v4263_v11 = vpop.f32.mrb[6].mxu0  ;;  %v6571_v29 = vadd.f32 %v4977_v34, %v3065_v24  ;;  %v5003_v26 = vadd.f32 %v6531_v47, %v6538_v22  ;;  %v5009_v40 = vadd.f32 %v6538_v22, %v6543_v31 }
 0x416   : > { %v4959_v13 = vadd.f32 %v4263_v11, %v6538_v22  ;;  %v1893_v30 = vpop.f32.mrb[7].mxu0  ;;  %v5005_v11 = vadd.f32 %v6538_v22, %v6533_v59 }
 0x417   : > { %v4961_v36 = vadd.f32 %v6538_v22, %v1893_v30  ;;  %3197 = vxpose.xlu0.b32.cont [2/16] %v4952_v44, 128  ;;  %v4598_v27 = vpop.f32.mrb[6].mxu1 }
 0x418   : > { %v4960_v45 = vadd.f32 %v4959_v13, %v4583_v37  ;;  %v6578_v25 = vadd.f32 %v4979_v42, %v4598_v27  ;;  %v3075_v16 = vpop.f32.mrb[7].mxu1 }
 0x419   : > { %v4962_v28 = vadd.f32 %v4961_v36, %v3025_v63  ;;  %v4266_v21 = vpop.f32.mrb[8].mxu0  ;;  %v6580_v33 = vadd.f32 %v4981_v53, %v3075_v16 }
 0x41a   : > { %v4963_v57 = vadd.f32 %v4266_v21, %v6538_v22  ;;  %v1903_v6 = vpop.f32.mrb[9].mxu0 }
 0x41b   : > { %v4965_v9 = vadd.f32 %v6538_v22, %v1903_v6  ;;  %3198 = vxpose.xlu0.b32.cont [3/16] %v4958_v51, 128  ;;  %v4601_v37 = vpop.f32.mrb[8].mxu1 }
 0x41c   : > { %v4964_v3 = vadd.f32 %v4963_v57, %v4586_v60  ;;  %v4984_v52 = vadd.f32 %v4983_v56, %v4601_v37  ;;  %v3085_v14 = vpop.f32.mrb[9].mxu1  ;;  %v4993_v60 = vadd.f32 %v6538_v22, %v6521_v62  ;;  %v4999_v62 = vadd.f32 %v6527_v23, %v6538_v22 }
 0x41d   : > { %v4966_v63 = vadd.f32 %v4965_v9, %v3035_v35  ;;  %v4986_v8 = vadd.f32 %v4985_v2, %v3085_v14 }
 0x41f   : > { %3199 = vxpose.xlu0.b32.cont [4/16] %v4956_v19, 128  ;;  %v4604_v4 = vpop.f32.mrb[10].mxu1  ;;  %3228 = vxpose.xlu1.b32.start [1/16] %v4986_v8, 128 }
 0x420   : > { %v4988_v44 = vadd.f32 %v4987_v55, %v4604_v4  ;;  %v3095_v43 = vpop.f32.mrb[11].mxu1 }
 0x421   : > { %v4990_v20 = vadd.f32 %v4989_v41, %v3095_v43 }
 0x423   : > { %3200 = vxpose.xlu0.b32.cont [5/16] %v4962_v28, 128  ;;  %v4607_v35 = vpop.f32.mrb[12].mxu1  ;;  %3229 = vxpose.xlu1.b32.cont [2/16] %v4984_v52, 128 }
 0x424   : > { %v4992_v46 = vadd.f32 %v4991_v5, %v4607_v35  ;;  %v3105_v38 = vpop.f32.mrb[13].mxu1 }
 0x425   : > { %v4994_v58 = vadd.f32 %v4993_v60, %v3105_v38 }
 0x427   : > { %3201 = vxpose.xlu0.b32.cont [6/16] %v4960_v45, 128  ;;  %v4610_v32 = vpop.f32.mrb[14].mxu1  ;;  %3230 = vxpose.xlu1.b32.cont [3/16] %v4990_v20, 128 }
 0x428   : > { %v4996_v34 = vadd.f32 %v4995_v50, %v4610_v32  ;;  %v3115_v61 = vpop.f32.mrb[15].mxu1 }
 0x429   : > { %v4998_v15 = vadd.f32 %v4997_v17, %v3115_v61 }
 0x42b   : > { %3202 = vxpose.xlu0.b32.cont [7/16] %v4966_v63, 128  ;;  %v4613_v19 = vpop.f32.mrb[16].mxu1  ;;  %3231 = vxpose.xlu1.b32.cont [4/16] %v4988_v44, 128 }
 0x42c   : > { %v5000_v24 = vadd.f32 %v4999_v62, %v4613_v19  ;;  %v3125_v18 = vpop.f32.mrb[17].mxu1 }
 0x42d   : > { %v5002_v51 = vadd.f32 %v5001_v1, %v3125_v18 }
 0x42f   : > { %3203 = vxpose.xlu0.b32.cont [8/16] %v4964_v3, 128  ;;  %v4616_v42 = vpop.f32.mrb[18].mxu1  ;;  %3232 = vxpose.xlu1.b32.cont [5/16] %v4994_v58, 128 }
 0x430   : > { %v5004_v13 = vadd.f32 %v5003_v26, %v4616_v42  ;;  %v3135_v23 = vpop.f32.mrb[19].mxu1 }
 0x431   : > { %v5006_v30 = vadd.f32 %v5005_v11, %v3135_v23 }
 0x433   : > { %3204 = vxpose.xlu0.b32.cont [9/16] %v6555_v49, 128  ;;  %v4619_v53 = vpop.f32.mrb[20].mxu1  ;;  %3233 = vxpose.xlu1.b32.cont [6/16] %v4992_v46, 128 }
 0x434   : > { %v5008_v36 = vadd.f32 %v6541_v10, %v4619_v53  ;;  %v3145_v27 = vpop.f32.mrb[21].mxu1 }
 0x435   : > { %v5010_v47 = vadd.f32 %v5009_v40, %v3145_v27 }
 0x437   : > { %3205 = vxpose.xlu0.b32.cont [10/16] %v6553_v39, 128  ;;  %v4622_v59 = vpop.f32.mrb[22].mxu1  ;;  %3234 = vxpose.xlu1.b32.cont [7/16] %v4998_v15, 128 }
 0x438   : > { %v5012_v45 = vadd.f32 %v6547_v0, %v4622_v59  ;;  %v3155_v16 = vpop.f32.mrb[23].mxu1 }
 0x439   : > { %v5014_v28 = vadd.f32 %v6551_v48, %v3155_v16 }
 0x43b   : > { %3206 = vxpose.xlu0.b32.cont [11/16] %v6563_v12, 128  ;;  %3235 = vxpose.xlu1.b32.cont [8/16] %v4996_v34, 128 }
 0x43f   : > { %3207 = vxpose.xlu0.b32.cont [12/16] %v6561_v7, 128  ;;  %3236 = vxpose.xlu1.b32.cont [9/16] %v5002_v51, 128 }
 0x443   : > { %3208 = vxpose.xlu0.b32.cont [13/16] %v6571_v29, 128  ;;  %3237 = vxpose.xlu1.b32.cont [10/16] %v5000_v24, 128 }
 0x447   : > { %3209 = vxpose.xlu0.b32.cont [14/16] %v6569_v54, 128  ;;  %3238 = vxpose.xlu1.b32.cont [11/16] %v5006_v30, 128 }
 0x44b   : > { %3210 = vxpose.xlu0.b32.cont [15/16] %v6580_v33, 128  ;;  %3239 = vxpose.xlu1.b32.cont [12/16] %v5004_v13, 128 }
 0x44f   : > { %3211 = vxpose.xlu0.b32.end [16/16] %v6578_v25, 128  ;;  %3240 = vxpose.xlu1.b32.cont [13/16] %v5010_v47, 128 }
 0x453   : > { %3241 = vxpose.xlu1.b32.cont [14/16] %v5008_v36, 128 }
 0x457   : > { %3242 = vxpose.xlu1.b32.cont [15/16] %v5014_v28, 128 }
 0x45b   : > { %3243 = vxpose.xlu1.b32.end [16/16] %v5012_v45, 128 }
 0x493   : > { %v3212_v22 = vpop.trf.xlu0 }
 0x494   : > { %3260 = vst [vmem:[%s6623_s11] sm:$0xff] %v3212_v22 }
 0x497   : > { %v3213_v10 = vpop.trf.xlu0 }
 0x498   : > { %3262 = vst [vmem:[%s6623_s11 + $0x10] sm:$0xff] %v3213_v10 }
 0x49b   : > { %v3214_v31 = vpop.trf.xlu0 }
 0x49c   : > { %3264 = vst [vmem:[%s6623_s11 + $0x20] sm:$0xff] %v3214_v31 }
 0x49f   : > { %v3244_v0 = vpop.trf.xlu1  ;;  %v3215_v48 = vpop.trf.xlu0 }
 0x4a0   : > { %3261 = vst [vmem:[%s6623_s11 + $0x8] sm:$0xff] %v3244_v0  ;;  %3266 = vst [vmem:[%s6623_s11 + $0x30] sm:$0xff] %v3215_v48 }
 0x4a3   : > { %v3245_v39 = vpop.trf.xlu1  ;;  %v3216_v49 = vpop.trf.xlu0 }
 0x4a4   : > { %3263 = vst [vmem:[%s6623_s11 + $0x18] sm:$0xff] %v3245_v39  ;;  %3268 = vst [vmem:[%s6623_s11 + $0x40] sm:$0xff] %v3216_v49 }
 0x4a7   : > { %v3246_v7 = vpop.trf.xlu1  ;;  %v3217_v12 = vpop.trf.xlu0 }
 0x4a8   : > { %3265 = vst [vmem:[%s6623_s11 + $0x28] sm:$0xff] %v3246_v7  ;;  %3270 = vst [vmem:[%s6623_s11 + $0x50] sm:$0xff] %v3217_v12 }
 0x4ab   : > { %v3247_v54 = vpop.trf.xlu1  ;;  %v3218_v29 = vpop.trf.xlu0 }
 0x4ac   : > { %3267 = vst [vmem:[%s6623_s11 + $0x38] sm:$0xff] %v3247_v54  ;;  %3272 = vst [vmem:[%s6623_s11 + $0x60] sm:$0xff] %v3218_v29 }
 0x4af   : > { %v3248_v25 = vpop.trf.xlu1  ;;  %v3219_v21 = vpop.trf.xlu0 }
 0x4b0   : > { %3269 = vst [vmem:[%s6623_s11 + $0x48] sm:$0xff] %v3248_v25  ;;  %3274 = vst [vmem:[%s6623_s11 + $0x70] sm:$0xff] %v3219_v21 }
 0x4b3   : > { %v3249_v33 = vpop.trf.xlu1  ;;  %v3220_v56 = vpop.trf.xlu0 }
 0x4b4   : > { %3271 = vst [vmem:[%s6623_s11 + $0x58] sm:$0xff] %v3249_v33  ;;  %3276 = vst [vmem:[%s6623_s11 + $0x80] sm:$0xff] %v3220_v56 }
 0x4b7   : > { %v3250_v57 = vpop.trf.xlu1  ;;  %v3221_v6 = vpop.trf.xlu0 }
 0x4b8   : > { %3273 = vst [vmem:[%s6623_s11 + $0x68] sm:$0xff] %v3250_v57  ;;  %3278 = vst [vmem:[%s6623_s11 + $0x90] sm:$0xff] %v3221_v6 }
 0x4bb   : > { %v3251_v2 = vpop.trf.xlu1  ;;  %v3222_v9 = vpop.trf.xlu0 }
 0x4bc   : > { %3275 = vst [vmem:[%s6623_s11 + $0x78] sm:$0xff] %v3251_v2  ;;  %3280 = vst [vmem:[%s6623_s11 + $0xa0] sm:$0xff] %v3222_v9 }
 0x4bf   : > { %v3252_v37 = vpop.trf.xlu1  ;;  %v3223_v3 = vpop.trf.xlu0 }
 0x4c0   : > { %3277 = vst [vmem:[%s6623_s11 + $0x88] sm:$0xff] %v3252_v37  ;;  %3282 = vst [vmem:[%s6623_s11 + $0xb0] sm:$0xff] %v3223_v3 }
 0x4c3   : > { %v3253_v52 = vpop.trf.xlu1  ;;  %v3224_v14 = vpop.trf.xlu0 }
 0x4c4   : > { %3279 = vst [vmem:[%s6623_s11 + $0x98] sm:$0xff] %v3253_v52  ;;  %3284 = vst [vmem:[%s6623_s11 + $0xc0] sm:$0xff] %v3224_v14 }
 0x4c7   : > { %v3254_v63 = vpop.trf.xlu1  ;;  %v3225_v8 = vpop.trf.xlu0 }
 0x4c8   : > { %3281 = vst [vmem:[%s6623_s11 + $0xa8] sm:$0xff] %v3254_v63  ;;  %3286 = vst [vmem:[%s6623_s11 + $0xd0] sm:$0xff] %v3225_v8 }
 0x4cb   : > { %v3255_v55 = vpop.trf.xlu1  ;;  %v3226_v41 = vpop.trf.xlu0 }
 0x4cc   : > { %3283 = vst [vmem:[%s6623_s11 + $0xb8] sm:$0xff] %v3255_v55  ;;  %3288 = vst [vmem:[%s6623_s11 + $0xe0] sm:$0xff] %v3226_v41 }
 0x4cf   : > { %v3256_v4 = vpop.trf.xlu1  ;;  %v3227_v44 = vpop.trf.xlu0 }
 0x4d0   : > { %3285 = vst [vmem:[%s6623_s11 + $0xc8] sm:$0xff] %v3256_v4  ;;  %3290 = vst [vmem:[%s6623_s11 + $0xf0] sm:$0xff] %v3227_v44 }
 0x4d3   : > { %v3257_v43 = vpop.trf.xlu1 }
 0x4d4   : > { %3287 = vst [vmem:[%s6623_s11 + $0xd8] sm:$0xff] %v3257_v43 }
 0x4d7   : > { %v3258_v20 = vpop.trf.xlu1 }
 0x4d8   : > { %3289 = vst [vmem:[%s6623_s11 + $0xe8] sm:$0xff] %v3258_v20 }
 0x4db   : > { %v3259_v5 = vpop.trf.xlu1 }
 0x4dc   : > { %3291 = vst [vmem:[%s6623_s11 + $0xf8] sm:$0xff] %v3259_v5 }
 0x4dd   : > { %5443 = shalt.err (!%p5440_p2)
}
 0x4de   : > { %s5444_s6 = scalar_lea.hbm %s6661_s9, 4096  ;;  %s5448_s8 = scalar_lea.hbm %s6713_s5, 8192 }
 0x4df   : > { %p5445_p13 = scmp.ne.s32.totalorder %s6661_s9, %s5444_s6  ;;  %p5449_p4 = scmp.lt.u32.totalorder %s6661_s9, %s6713_s5 }
 0x4e0   : > { %p5450_p5 = scmp.lt.u32.totalorder %s5448_s8, %s5444_s6  ;;  %p5452_p11 = scmp.lt.u32.totalorder %s5444_s6, %s6661_s9 }
 0x4e1   : > { %p5446_p6 = pnand %p5445_p13, %p6763_p0 }
 0x4e2   : > { %p5451_p8 = por %p5450_p5, %p5449_p4 }
 0x4e3   : > { %p5447_p10 = pneg %p5446_p6 }
 0x4e4   : > { %p5453_p1 = por %p5452_p11, %p5451_p8 }
 0x4e6   : > { %p5454_p3 = pnand %p5453_p1, %p5447_p10 }
 0x4e8   : > { %5457 = shalt.err (!%p5454_p3)
}
 0x4e9   : > { %s5513_s28 = smov 256   ;;  %s5514_s15 = smov 16  }
 0x4ea   : > { %5249 = dma.vmem_to_hbm [thread:$0]  (%p6763_p0), %s6663_s30, 4096, %s6661_s9, %s3293_s12, %s5513_s28, %s5513_s28, %s5514_s15  }
 0x4eb PF: > { %s3321_s16 = sand.u32 1, %s5488_s18   ;;  %p6764_p7 = scmp.ne.s32.totalorder %s6736_s25, 0 }
 0x4ec   : > { %p6765_p9 = scmp.ge.s32.totalorder %s5500_s21, 2  ;;  %s3322_s13 = scalar_lea.sflag [#allocation5], %s3321_s16 }
 0x4ee   : > { %p5263_p12 = pnand %p6765_p9, %p6764_p7 }
 0x4f0   : > { %5483 = dma.done.wait (!%p5263_p12), %s3322_s13, 4096  }
 0x4f1   : > { %5485 = vsyncadd (!%p5263_p12), %s3322_s13, 4294963200  ;;  %p19_p2 = scmp.ge.s32.totalorder %s5655_s14, 4   ;;  %s6766_s18 = smov %s5492_s19 }
 0x4f2   : > { %s6767_s19 = smov %s5496_s20  ;;  %s6768_s20 = smov %s5671_s27 }
 0x4f3   : > { %s6769_s21 = smov %s5655_s14  ;;  %21 = sbr.rel (!%p19_p2) target bundleno = 6 (0x6), region = 102 }
 0x4fa   :  { %3327 = vsyncpa [#allocation4], 1 }
 0x4fb   :  { %3329 = vsyncpa [#allocation4 + $0x1], 1 }
 0x4fc   :  { %3330 = vsyncpa [#allocation7], 1 }
 0x4fd   :  { %3331 = vsyncpa [#allocation5], 1 }
 0x4fe   :  { %3333 = vsyncpa [#allocation5 + $0x1], 1 }

</bundles_post_ra>
